<compile_context>
chip_gen: v7x
topology: tpu7x:2x2x1
jax: 0.10.0
libtpu: 0.0.40
codegen_flags: <defaults>
</compile_context>

<pallas_src>
import math

import jax
import jax.numpy as jnp
from jax.experimental import pallas as pl
from jax.experimental.pallas import tpu as pltpu


# ---- packed-parameter layout (static offsets used by the kernel) ------------
# bias pack: (8, 1280) f32, one row per vector (biases + int8 dequant scale).
_B_F1, _B_F2C1, _B_SCALE, _B_C2, _B_C3, _B_D1, _B_D2, _B_D3 = range(8)

# weight pack: (224, 128) bf16, lane-dense.
#   rows   0:128  cols 0:64  = wc2[0:128, :]   (split-K half A)
#   rows   0:128  cols 64:128= wc2[128:256, :] (split-K half B)
#   rows 128:160  cols 0:3   = stem W^T (32,3), col 3 = stem bias (32,1)
#   rows 160:162  cols 0:64  = wc3^T  (2,64)
#   rows 176:184  cols 0:4   = wd1^T  (8,4)
#   rows 192:200  cols 0:8   = wd2^T  (8,8)
#   rows 208:210  cols 0:8   = wd3^T  (2,8)
_STEM_R0 = 128
_WC3_R0 = 160
_WD1_R0 = 176
_WD2_R0 = 192
_WD3_R0 = 208
_WPACK_ROWS, _WPACK_COLS = 224, 128


def _imgpack_kernel(img_ref, sp_ref, wf1_ref, wq_ref, bias_ref, wpack_ref,
                    out_ref):
    f32 = jnp.float32
    bf16 = jnp.bfloat16

    # --- self.feature(img) ---------------------------------------------------
    # TODO(synk): the MobileNetV2 class definition is not provided in the source;
    # a 1x1-conv stem (ReLU6) + global-average-pool head stands in for the full
    # inverted-residual stack.
    img = img_ref[...]                                    # (N, 3, S) f32, S lane-dense
    stem = wpack_ref[_STEM_R0:_STEM_R0 + 32, 0:4].astype(f32)   # (32, 4)
    w0 = stem[None, :, 0:1]                               # (1, 32, 1)
    w1 = stem[None, :, 1:2]
    w2 = stem[None, :, 2:3]
    bst = stem[None, :, 3:4]
    # 3 unrolled broadcast-FMAs on the VPU; spatial axis stays in lanes.
    h = (img[:, 0:1, :] * w0 + img[:, 1:2, :] * w1 + img[:, 2:3, :] * w2 + bst)
    h = jnp.clip(h, 0.0, 6.0)                             # ReLU6 (f32 VPU)
    pooled = jnp.mean(h, axis=-1)                         # (N, 32) lane reduce

    # --- feature head: Linear(32 -> 1280) + ReLU6 (bf16 MXU, f32 accumulate) --
    b_f1 = bias_ref[_B_F1:_B_F1 + 1, 0:1280]              # (1, 1280)
    f = jnp.dot(pooled.astype(bf16), wf1_ref[...],
                preferred_element_type=f32) + b_f1
    f = jnp.clip(f, 0.0, 6.0)

    # --- folded (feature head 1280->1000) @ (classifier Linear 1000->256) -----
    #     Exact fold: no nonlinearity between them; Dropout(0.2) is identity at
    #     inference.  Weight is int8 with a per-output-column scale; int8->bf16
    #     is exact, scale is applied after the matmul.
    b_f2c1 = bias_ref[_B_F2C1:_B_F2C1 + 1, 0:256]         # (1, 256)
    s_f2c1 = bias_ref[_B_SCALE:_B_SCALE + 1, 0:256]       # (1, 256)
    wq = wq_ref[...].astype(bf16)                         # (1280, 256)
    c1 = jnp.dot(f.astype(bf16), wq, preferred_element_type=f32) * s_f2c1 + b_f2c1
    c1 = jnp.maximum(c1, 0.0)                             # ReLU of Linear(1000,256)

    # --- classifier Linear(256 -> 64) + ReLU as split-K bf16 matmul -----------
    bc2 = bias_ref[_B_C2:_B_C2 + 1, 0:64]
    c1b = c1.astype(bf16)
    c2 = (jnp.dot(c1b[:, 0:128], wpack_ref[0:128, 0:64],
                  preferred_element_type=f32)
          + jnp.dot(c1b[:, 128:256], wpack_ref[0:128, 64:128],
                    preferred_element_type=f32)
          + bc2)
    c2 = jnp.maximum(c2, 0.0)                             # (N, 64)

    # --- tiny dependent tail on the VPU (broadcast-mul + lane reduce) ---------
    def vpu_linear(x, w_t):
        # x: (N, K) f32, w_t: (M, K) f32 -> (N, M); avoids MXU round-trips.
        cols = [jnp.sum(x * w_t[j:j + 1, :], axis=-1, keepdims=True)
                for j in range(w_t.shape[0])]
        return jnp.concatenate(cols, axis=-1)

    wc3_t = wpack_ref[_WC3_R0:_WC3_R0 + 2, 0:64].astype(f32)     # (2, 64)
    bc3 = bias_ref[_B_C3:_B_C3 + 1, 0:2]
    c3 = vpu_linear(c2, wc3_t) + bc3                      # (N, 2) classifier out

    # torch.cat([splittedimg, x], dim=1) then decider Linear(4,8)/ReLU/...
    x4 = jnp.concatenate([sp_ref[...], c3], axis=-1)      # (N, 4)
    wd1_t = wpack_ref[_WD1_R0:_WD1_R0 + 8, 0:4].astype(f32)
    bd1 = bias_ref[_B_D1:_B_D1 + 1, 0:8]
    d = jnp.maximum(vpu_linear(x4, wd1_t) + bd1, 0.0)

    wd2_t = wpack_ref[_WD2_R0:_WD2_R0 + 8, 0:8].astype(f32)
    bd2 = bias_ref[_B_D2:_B_D2 + 1, 0:8]
    d = jnp.maximum(vpu_linear(d, wd2_t) + bd2, 0.0)

    wd3_t = wpack_ref[_WD3_R0:_WD3_R0 + 2, 0:8].astype(f32)
    bd3 = bias_ref[_B_D3:_B_D3 + 1, 0:2]
    d = vpu_linear(d, wd3_t) + bd3                        # (N, 2)

    # --- torch.softmax(obj, dim=-1) (f32; exp on EUP, approx reciprocal) ------
    m = jnp.max(d, axis=-1, keepdims=True)
    e = jnp.exp(d - m)
    out_ref[...] = e * pl.reciprocal(jnp.sum(e, axis=-1, keepdims=True),
                                     approx=True)


def imgpack_model2(img_nchw, splittedimg, bbox, mappedbox, params):
    """Mirrors ImgPackModel2.forward(img, splittedimg, bbox, mappedbox)."""
    del bbox, mappedbox  # unused by the PyTorch forward as well
    wf1, wq, bias_pack, w_pack = params

    n, c, h, w = img_nchw.shape
    # Pure reshape (no NCHW->NHWC transpose): spatial axis becomes the lane dim.
    img = img_nchw.reshape(n, c, h * w).astype(jnp.float32)
    sp = splittedimg.astype(jnp.float32)
    args = (img, sp, wf1, wq, bias_pack, w_pack)

    # Memory-bound cost hint: bytes dominated by the int8 folded weight (~0.5 MB).
    bytes_accessed = sum(int(a.size) * a.dtype.itemsize for a in args) + n * 2 * 4
    flops = 2 * n * (3 * 32 * h * w + 32 * 1280 + 1280 * 256 + 256 * 64
                     + 64 * 2 + 4 * 8 + 8 * 8 + 8 * 2)

    # TODO(synk): in a serving loop, keep the four parameter arrays VMEM-resident
    # across calls (P10 cross-pallas_call prefetch: start the weight DMA in a
    # prior call and return the semaphore + VMEM ref) instead of re-DMAing them
    # every invocation; that DMA is essentially the whole kernel cost at N=2.
    vmem_spec = pl.BlockSpec(memory_space=pltpu.MemorySpace.VMEM)
    return pl.pallas_call(
        _imgpack_kernel,
        out_shape=jax.ShapeDtypeStruct((n, 2), jnp.float32),
        in_specs=[vmem_spec] * len(args),
        out_specs=vmem_spec,
        compiler_params=pltpu.CompilerParams(vmem_limit_bytes=16 << 20),
        cost_estimate=pl.CostEstimate(flops=int(flops),
                                      transcendentals=int(2 * n),
                                      bytes_accessed=int(bytes_accessed)),
    )(*args)


def init_params(key):
    """PyTorch-Linear-style init, then offline fold + int8 quant + bf16 packing."""
    f32 = jnp.float32

    def linear(k, fin, fout):
        kw, kb = jax.random.split(k)
        bound = 1.0 / math.sqrt(fin)
        wgt = jax.random.uniform(kw, (fin, fout), f32, -bound, bound)
        b = jax.random.uniform(kb, (1, fout), f32, -bound, bound)
        return wgt, b

    ks = jax.random.split(key, 9)
    w_stem, b_stem = linear(ks[0], 3, 32)        # feature stem (1x1 conv as matmul)
    w_f1, b_f1 = linear(ks[1], 32, 1280)         # feature head
    w_f2, b_f2 = linear(ks[2], 1280, 1000)       # -> 1000-dim feature
    wc1, bc1 = linear(ks[3], 1000, 256)          # classifier
    wc2, bc2 = linear(ks[4], 256, 64)
    wc3, bc3 = linear(ks[5], 64, 2)
    wd1, bd1 = linear(ks[6], 4, 8)               # decider
    wd2, bd2 = linear(ks[7], 8, 8)
    wd3, bd3 = linear(ks[8], 8, 2)

    # Fold W_feat2 @ Wc1 (exact: no nonlinearity between the two layers).
    w_f2c1 = jnp.dot(w_f2, wc1)                  # (1280, 256)
    b_f2c1 = jnp.dot(b_f2, wc1) + bc1            # (1, 256)

    # int8 quantization of the folded weight with a per-output-column f32 scale.
    absmax = jnp.max(jnp.abs(w_f2c1), axis=0)    # (256,)
    scale = jnp.maximum(absmax, 1e-12) / 127.0
    w_f2c1_q = jnp.clip(jnp.round(w_f2c1 / scale[None, :]),
                        -127.0, 127.0).astype(jnp.int8)

    # Bias/scale pack: one vector per row of a wide, lane-dense f32 array.
    bias_pack = jnp.zeros((8, 1280), f32)
    bias_pack = bias_pack.at[_B_F1, :1280].set(b_f1[0])
    bias_pack = bias_pack.at[_B_F2C1, :256].set(b_f2c1[0])
    bias_pack = bias_pack.at[_B_SCALE, :256].set(scale)
    bias_pack = bias_pack.at[_B_C2, :64].set(bc2[0])
    bias_pack = bias_pack.at[_B_C3, :2].set(bc3[0])
    bias_pack = bias_pack.at[_B_D1, :8].set(bd1[0])
    bias_pack = bias_pack.at[_B_D2, :8].set(bd2[0])
    bias_pack = bias_pack.at[_B_D3, :2].set(bd3[0])

    # Small-weights pack: bf16, 128 lanes wide (lane-dense); wc2 split-K halves.
    wp = jnp.zeros((_WPACK_ROWS, _WPACK_COLS), f32)
    wp = wp.at[0:128, 0:64].set(wc2[0:128, :])
    wp = wp.at[0:128, 64:128].set(wc2[128:256, :])
    wp = wp.at[_STEM_R0:_STEM_R0 + 32, 0:3].set(w_stem.T)      # (32, 3)
    wp = wp.at[_STEM_R0:_STEM_R0 + 32, 3:4].set(b_stem.T)      # (32, 1)
    wp = wp.at[_WC3_R0:_WC3_R0 + 2, 0:64].set(wc3.T)           # (2, 64)
    wp = wp.at[_WD1_R0:_WD1_R0 + 8, 0:4].set(wd1.T)            # (8, 4)
    wp = wp.at[_WD2_R0:_WD2_R0 + 8, 0:8].set(wd2.T)            # (8, 8)
    wp = wp.at[_WD3_R0:_WD3_R0 + 2, 0:8].set(wd3.T)            # (2, 8)
    w_pack = wp.astype(jnp.bfloat16)

    return (w_f1.astype(jnp.bfloat16),      # (32, 1280)   bf16
            w_f2c1_q,                       # (1280, 256)  int8 (per-col scale in bias pack)
            bias_pack,                      # (8, 1280)    f32
            w_pack)                         # (224, 128)   bf16


if __name__ == "__main__":
    key = jax.random.PRNGKey(0)
    k_img, k_sp, k_p = jax.random.split(key, 3)

    img = jax.random.normal(k_img, (2, 3, 16, 16), jnp.float32)   # NCHW like PyTorch
    splittedimg = jax.random.normal(k_sp, (2, 2), jnp.float32)    # concatenated to the 2-logit head
    bbox = jnp.zeros((2, 4), jnp.float32)                         # unused in forward
    mappedbox = jnp.zeros((2, 4), jnp.float32)                    # unused in forward

    params = init_params(k_p)
    out = imgpack_model2(img, splittedimg, bbox, mappedbox, params)
    out = jax.block_until_ready(out)

    assert out.shape == (2, 2)
    assert bool(jnp.all(jnp.isfinite(out)))
    # softmax rows must sum to ~1 (approx reciprocal => loose tolerance)
    assert bool(jnp.allclose(jnp.sum(out, axis=-1), 1.0, atol=5e-3))
    print("KERNEL_OK")
</pallas_src>

<mosaic_0001>
module attributes {stable_mosaic.version = 11 : i64} {
  func.func @_imgpack_kernel(%arg0: memref<2x3x256xf32, #tpu.memory_space<vmem>>, %arg1: memref<2x2xf32, #tpu.memory_space<vmem>>, %arg2: memref<32x1280xbf16, #tpu.memory_space<vmem>>, %arg3: memref<1280x256xi8, #tpu.memory_space<vmem>>, %arg4: memref<8x1280xf32, #tpu.memory_space<vmem>>, %arg5: memref<224x128xbf16, #tpu.memory_space<vmem>>, %arg6: memref<2x2xf32, #tpu.memory_space<vmem>>) attributes {dimension_semantics = [], scalar_prefetch = 0 : i64, scratch_operands = 0 : i64, tpu.core_type = #tpu.core_type<tc>} {
    %c0 = arith.constant 0 : index
    %c0_0 = arith.constant 0 : index
    %c0_1 = arith.constant 0 : index
    %0 = vector.load %arg0[%c0, %c0_0, %c0_1] : memref<2x3x256xf32, #tpu.memory_space<vmem>>, vector<2x3x256xf32>
    %c128 = arith.constant 128 : index
    %c0_2 = arith.constant 0 : index
    %1 = vector.load %arg5[%c128, %c0_2] : memref<224x128xbf16, #tpu.memory_space<vmem>>, vector<32x4xbf16>
    %2 = arith.extf %1 : vector<32x4xbf16> to vector<32x4xf32>
    %3 = vector.extract_strided_slice %2 {offsets = [0, 0], sizes = [32, 1], strides = [1, 1]} : vector<32x4xf32> to vector<32x1xf32>
    %4 = vector.shape_cast %3 : vector<32x1xf32> to vector<1x32x1xf32>
    %5 = vector.extract_strided_slice %2 {offsets = [0, 1], sizes = [32, 1], strides = [1, 1]} : vector<32x4xf32> to vector<32x1xf32>
    %6 = vector.shape_cast %5 : vector<32x1xf32> to vector<1x32x1xf32>
    %7 = vector.extract_strided_slice %2 {offsets = [0, 2], sizes = [32, 1], strides = [1, 1]} : vector<32x4xf32> to vector<32x1xf32>
    %8 = vector.shape_cast %7 : vector<32x1xf32> to vector<1x32x1xf32>
    %9 = vector.extract_strided_slice %2 {offsets = [0, 3], sizes = [32, 1], strides = [1, 1]} : vector<32x4xf32> to vector<32x1xf32>
    %10 = vector.shape_cast %9 : vector<32x1xf32> to vector<1x32x1xf32>
    %11 = vector.extract_strided_slice %0 {offsets = [0, 0, 0], sizes = [2, 1, 256], strides = [1, 1, 1]} : vector<2x3x256xf32> to vector<2x1x256xf32>
    %12 = vector.broadcast %11 : vector<2x1x256xf32> to vector<2x32x256xf32>
    %13 = vector.broadcast %4 : vector<1x32x1xf32> to vector<2x32x256xf32>
    %14 = arith.mulf %12, %13 : vector<2x32x256xf32>
    %15 = vector.extract_strided_slice %0 {offsets = [0, 1, 0], sizes = [2, 1, 256], strides = [1, 1, 1]} : vector<2x3x256xf32> to vector<2x1x256xf32>
    %16 = vector.broadcast %15 : vector<2x1x256xf32> to vector<2x32x256xf32>
    %17 = vector.broadcast %6 : vector<1x32x1xf32> to vector<2x32x256xf32>
    %18 = arith.mulf %16, %17 : vector<2x32x256xf32>
    %19 = arith.addf %14, %18 : vector<2x32x256xf32>
    %20 = vector.extract_strided_slice %0 {offsets = [0, 2, 0], sizes = [2, 1, 256], strides = [1, 1, 1]} : vector<2x3x256xf32> to vector<2x1x256xf32>
    %21 = vector.broadcast %20 : vector<2x1x256xf32> to vector<2x32x256xf32>
    %22 = vector.broadcast %8 : vector<1x32x1xf32> to vector<2x32x256xf32>
    %23 = arith.mulf %21, %22 : vector<2x32x256xf32>
    %24 = arith.addf %19, %23 : vector<2x32x256xf32>
    %25 = vector.broadcast %10 : vector<1x32x1xf32> to vector<2x32x256xf32>
    %26 = arith.addf %24, %25 : vector<2x32x256xf32>
    %cst = arith.constant 0.000000e+00 : f32
    %cst_3 = arith.constant 6.000000e+00 : f32
    %27 = vector.broadcast %cst : f32 to vector<2x32x256xf32>
    %28 = arith.maximumf %27, %26 : vector<2x32x256xf32>
    %29 = vector.broadcast %cst_3 : f32 to vector<2x32x256xf32>
    %30 = arith.minimumf %29, %28 : vector<2x32x256xf32>
    %cst_4 = arith.constant dense<0.000000e+00> : vector<2x32xf32>
    %31 = vector.multi_reduction <add>, %30, %cst_4 [2] : vector<2x32x256xf32> to vector<2x32xf32>
    %cst_5 = arith.constant 2.560000e+02 : f32
    %32 = vector.broadcast %cst_5 : f32 to vector<2x32xf32>
    %33 = arith.divf %31, %32 : vector<2x32xf32>
    %c0_6 = arith.constant 0 : index
    %c0_7 = arith.constant 0 : index
    %34 = vector.load %arg4[%c0_6, %c0_7] : memref<8x1280xf32, #tpu.memory_space<vmem>>, vector<1x1280xf32>
    %35 = arith.truncf %33 : vector<2x32xf32> to vector<2x32xbf16>
    %c0_8 = arith.constant 0 : index
    %c0_9 = arith.constant 0 : index
    %36 = vector.load %arg2[%c0_8, %c0_9] : memref<32x1280xbf16, #tpu.memory_space<vmem>>, vector<32x1280xbf16>
    %cst_10 = arith.constant dense<0.000000e+00> : vector<2x1280xf32>
    %37 = tpu.matmul %35, %36, %cst_10 {dimension_numbers = #tpu.dot_dimension_numbers<[1], [0], [0], [1], [0, 0, 1, 1], [], []>} : vector<2x32xbf16>, vector<32x1280xbf16>, vector<2x1280xf32> -> vector<2x1280xf32>
    %38 = vector.broadcast %34 : vector<1x1280xf32> to vector<2x1280xf32>
    %39 = arith.addf %37, %38 : vector<2x1280xf32>
    %cst_11 = arith.constant 0.000000e+00 : f32
    %cst_12 = arith.constant 6.000000e+00 : f32
    %40 = vector.broadcast %cst_11 : f32 to vector<2x1280xf32>
    %41 = arith.maximumf %40, %39 : vector<2x1280xf32>
    %42 = vector.broadcast %cst_12 : f32 to vector<2x1280xf32>
    %43 = arith.minimumf %42, %41 : vector<2x1280xf32>
    %c1 = arith.constant 1 : index
    %c0_13 = arith.constant 0 : index
    %44 = vector.load %arg4[%c1, %c0_13] : memref<8x1280xf32, #tpu.memory_space<vmem>>, vector<1x256xf32>
    %c2 = arith.constant 2 : index
    %c0_14 = arith.constant 0 : index
    %45 = vector.load %arg4[%c2, %c0_14] : memref<8x1280xf32, #tpu.memory_space<vmem>>, vector<1x256xf32>
    %c0_15 = arith.constant 0 : index
    %c0_16 = arith.constant 0 : index
    %46 = vector.load %arg3[%c0_15, %c0_16] : memref<1280x256xi8, #tpu.memory_space<vmem>>, vector<1280x256xi8>
    %47 = arith.sitofp %46 : vector<1280x256xi8> to vector<1280x256xbf16>
    %48 = arith.truncf %43 : vector<2x1280xf32> to vector<2x1280xbf16>
    %cst_17 = arith.constant dense<0.000000e+00> : vector<2x256xf32>
    %49 = tpu.matmul %48, %47, %cst_17 {dimension_numbers = #tpu.dot_dimension_numbers<[1], [0], [0], [1], [0, 0, 1, 1], [], []>} : vector<2x1280xbf16>, vector<1280x256xbf16>, vector<2x256xf32> -> vector<2x256xf32>
    %50 = vector.broadcast %45 : vector<1x256xf32> to vector<2x256xf32>
    %51 = arith.mulf %49, %50 : vector<2x256xf32>
    %52 = vector.broadcast %44 : vector<1x256xf32> to vector<2x256xf32>
    %53 = arith.addf %51, %52 : vector<2x256xf32>
    %cst_18 = arith.constant 0.000000e+00 : f32
    %54 = vector.broadcast %cst_18 : f32 to vector<2x256xf32>
    %55 = arith.maximumf %53, %54 : vector<2x256xf32>
    %c3 = arith.constant 3 : index
    %c0_19 = arith.constant 0 : index
    %56 = vector.load %arg4[%c3, %c0_19] : memref<8x1280xf32, #tpu.memory_space<vmem>>, vector<1x64xf32>
    %57 = arith.truncf %55 : vector<2x256xf32> to vector<2x256xbf16>
    %58 = vector.extract_strided_slice %57 {offsets = [0, 0], sizes = [2, 128], strides = [1, 1]} : vector<2x256xbf16> to vector<2x128xbf16>
    %c0_20 = arith.constant 0 : index
    %c0_21 = arith.constant 0 : index
    %59 = vector.load %arg5[%c0_20, %c0_21] : memref<224x128xbf16, #tpu.memory_space<vmem>>, vector<128x64xbf16>
    %cst_22 = arith.constant dense<0.000000e+00> : vector<2x64xf32>
    %60 = tpu.matmul %58, %59, %cst_22 {dimension_numbers = #tpu.dot_dimension_numbers<[1], [0], [0], [1], [0, 0, 1, 1], [], []>} : vector<2x128xbf16>, vector<128x64xbf16>, vector<2x64xf32> -> vector<2x64xf32>
    %61 = vector.extract_strided_slice %57 {offsets = [0, 128], sizes = [2, 128], strides = [1, 1]} : vector<2x256xbf16> to vector<2x128xbf16>
    %c0_23 = arith.constant 0 : index
    %c64 = arith.constant 64 : index
    %62 = vector.load %arg5[%c0_23, %c64] : memref<224x128xbf16, #tpu.memory_space<vmem>>, vector<128x64xbf16>
    %cst_24 = arith.constant dense<0.000000e+00> : vector<2x64xf32>
    %63 = tpu.matmul %61, %62, %cst_24 {dimension_numbers = #tpu.dot_dimension_numbers<[1], [0], [0], [1], [0, 0, 1, 1], [], []>} : vector<2x128xbf16>, vector<128x64xbf16>, vector<2x64xf32> -> vector<2x64xf32>
    %64 = arith.addf %60, %63 : vector<2x64xf32>
    %65 = vector.broadcast %56 : vector<1x64xf32> to vector<2x64xf32>
    %66 = arith.addf %64, %65 : vector<2x64xf32>
    %cst_25 = arith.constant 0.000000e+00 : f32
    %67 = vector.broadcast %cst_25 : f32 to vector<2x64xf32>
    %68 = arith.maximumf %66, %67 : vector<2x64xf32>
    %c160 = arith.constant 160 : index
    %c0_26 = arith.constant 0 : index
    %69 = vector.load %arg5[%c160, %c0_26] : memref<224x128xbf16, #tpu.memory_space<vmem>>, vector<2x64xbf16>
    %70 = arith.extf %69 : vector<2x64xbf16> to vector<2x64xf32>
    %c4 = arith.constant 4 : index
    %c0_27 = arith.constant 0 : index
    %71 = vector.load %arg4[%c4, %c0_27] : memref<8x1280xf32, #tpu.memory_space<vmem>>, vector<1x2xf32>
    %72 = vector.extract_strided_slice %70 {offsets = [0, 0], sizes = [1, 64], strides = [1, 1]} : vector<2x64xf32> to vector<1x64xf32>
    %73 = vector.broadcast %72 : vector<1x64xf32> to vector<2x64xf32>
    %74 = arith.mulf %68, %73 : vector<2x64xf32>
    %cst_28 = arith.constant dense<0.000000e+00> : vector<2xf32>
    %75 = vector.multi_reduction <add>, %74, %cst_28 [1] : vector<2x64xf32> to vector<2xf32>
    %76 = vector.shape_cast %75 : vector<2xf32> to vector<2x1xf32>
    %77 = vector.extract_strided_slice %70 {offsets = [1, 0], sizes = [1, 64], strides = [1, 1]} : vector<2x64xf32> to vector<1x64xf32>
    %78 = vector.broadcast %77 : vector<1x64xf32> to vector<2x64xf32>
    %79 = arith.mulf %68, %78 : vector<2x64xf32>
    %cst_29 = arith.constant dense<0.000000e+00> : vector<2xf32>
    %80 = vector.multi_reduction <add>, %79, %cst_29 [1] : vector<2x64xf32> to vector<2xf32>
    %81 = vector.shape_cast %80 : vector<2xf32> to vector<2x1xf32>
    %82 = tpu.concatenate %76, %81 in 1 : vector<2x1xf32>, vector<2x1xf32> -> vector<2x2xf32>
    %83 = vector.broadcast %71 : vector<1x2xf32> to vector<2x2xf32>
    %84 = arith.addf %82, %83 : vector<2x2xf32>
    %c0_30 = arith.constant 0 : index
    %c0_31 = arith.constant 0 : index
    %85 = vector.load %arg1[%c0_30, %c0_31] : memref<2x2xf32, #tpu.memory_space<vmem>>, vector<2x2xf32>
    %86 = tpu.concatenate %85, %84 in 1 : vector<2x2xf32>, vector<2x2xf32> -> vector<2x4xf32>
    %c176 = arith.constant 176 : index
    %c0_32 = arith.constant 0 : index
    %87 = vector.load %arg5[%c176, %c0_32] : memref<224x128xbf16, #tpu.memory_space<vmem>>, vector<8x4xbf16>
    %88 = arith.extf %87 : vector<8x4xbf16> to vector<8x4xf32>
    %c5 = arith.constant 5 : index
    %c0_33 = arith.constant 0 : index
    %89 = vector.load %arg4[%c5, %c0_33] : memref<8x1280xf32, #tpu.memory_space<vmem>>, vector<1x8xf32>
    %90 = vector.extract_strided_slice %88 {offsets = [0, 0], sizes = [1, 4], strides = [1, 1]} : vector<8x4xf32> to vector<1x4xf32>
    %91 = vector.broadcast %90 : vector<1x4xf32> to vector<2x4xf32>
    %92 = arith.mulf %86, %91 : vector<2x4xf32>
    %cst_34 = arith.constant dense<0.000000e+00> : vector<2xf32>
    %93 = vector.multi_reduction <add>, %92, %cst_34 [1] : vector<2x4xf32> to vector<2xf32>
    %94 = vector.shape_cast %93 : vector<2xf32> to vector<2x1xf32>
    %95 = vector.extract_strided_slice %88 {offsets = [1, 0], sizes = [1, 4], strides = [1, 1]} : vector<8x4xf32> to vector<1x4xf32>
    %96 = vector.broadcast %95 : vector<1x4xf32> to vector<2x4xf32>
    %97 = arith.mulf %86, %96 : vector<2x4xf32>
    %cst_35 = arith.constant dense<0.000000e+00> : vector<2xf32>
    %98 = vector.multi_reduction <add>, %97, %cst_35 [1] : vector<2x4xf32> to vector<2xf32>
    %99 = vector.shape_cast %98 : vector<2xf32> to vector<2x1xf32>
    %100 = vector.extract_strided_slice %88 {offsets = [2, 0], sizes = [1, 4], strides = [1, 1]} : vector<8x4xf32> to vector<1x4xf32>
    %101 = vector.broadcast %100 : vector<1x4xf32> to vector<2x4xf32>
    %102 = arith.mulf %86, %101 : vector<2x4xf32>
    %cst_36 = arith.constant dense<0.000000e+00> : vector<2xf32>
    %103 = vector.multi_reduction <add>, %102, %cst_36 [1] : vector<2x4xf32> to vector<2xf32>
    %104 = vector.shape_cast %103 : vector<2xf32> to vector<2x1xf32>
    %105 = vector.extract_strided_slice %88 {offsets = [3, 0], sizes = [1, 4], strides = [1, 1]} : vector<8x4xf32> to vector<1x4xf32>
    %106 = vector.broadcast %105 : vector<1x4xf32> to vector<2x4xf32>
    %107 = arith.mulf %86, %106 : vector<2x4xf32>
    %cst_37 = arith.constant dense<0.000000e+00> : vector<2xf32>
    %108 = vector.multi_reduction <add>, %107, %cst_37 [1] : vector<2x4xf32> to vector<2xf32>
    %109 = vector.shape_cast %108 : vector<2xf32> to vector<2x1xf32>
    %110 = vector.extract_strided_slice %88 {offsets = [4, 0], sizes = [1, 4], strides = [1, 1]} : vector<8x4xf32> to vector<1x4xf32>
    %111 = vector.broadcast %110 : vector<1x4xf32> to vector<2x4xf32>
    %112 = arith.mulf %86, %111 : vector<2x4xf32>
    %cst_38 = arith.constant dense<0.000000e+00> : vector<2xf32>
    %113 = vector.multi_reduction <add>, %112, %cst_38 [1] : vector<2x4xf32> to vector<2xf32>
    %114 = vector.shape_cast %113 : vector<2xf32> to vector<2x1xf32>
    %115 = vector.extract_strided_slice %88 {offsets = [5, 0], sizes = [1, 4], strides = [1, 1]} : vector<8x4xf32> to vector<1x4xf32>
    %116 = vector.broadcast %115 : vector<1x4xf32> to vector<2x4xf32>
    %117 = arith.mulf %86, %116 : vector<2x4xf32>
    %cst_39 = arith.constant dense<0.000000e+00> : vector<2xf32>
    %118 = vector.multi_reduction <add>, %117, %cst_39 [1] : vector<2x4xf32> to vector<2xf32>
    %119 = vector.shape_cast %118 : vector<2xf32> to vector<2x1xf32>
    %120 = vector.extract_strided_slice %88 {offsets = [6, 0], sizes = [1, 4], strides = [1, 1]} : vector<8x4xf32> to vector<1x4xf32>
    %121 = vector.broadcast %120 : vector<1x4xf32> to vector<2x4xf32>
    %122 = arith.mulf %86, %121 : vector<2x4xf32>
    %cst_40 = arith.constant dense<0.000000e+00> : vector<2xf32>
    %123 = vector.multi_reduction <add>, %122, %cst_40 [1] : vector<2x4xf32> to vector<2xf32>
    %124 = vector.shape_cast %123 : vector<2xf32> to vector<2x1xf32>
    %125 = vector.extract_strided_slice %88 {offsets = [7, 0], sizes = [1, 4], strides = [1, 1]} : vector<8x4xf32> to vector<1x4xf32>
    %126 = vector.broadcast %125 : vector<1x4xf32> to vector<2x4xf32>
    %127 = arith.mulf %86, %126 : vector<2x4xf32>
    %cst_41 = arith.constant dense<0.000000e+00> : vector<2xf32>
    %128 = vector.multi_reduction <add>, %127, %cst_41 [1] : vector<2x4xf32> to vector<2xf32>
    %129 = vector.shape_cast %128 : vector<2xf32> to vector<2x1xf32>
    %130 = tpu.concatenate %94, %99, %104, %109, %114, %119, %124, %129 in 1 : vector<2x1xf32>, vector<2x1xf32>, vector<2x1xf32>, vector<2x1xf32>, vector<2x1xf32>, vector<2x1xf32>, vector<2x1xf32>, vector<2x1xf32> -> vector<2x8xf32>
    %131 = vector.broadcast %89 : vector<1x8xf32> to vector<2x8xf32>
    %132 = arith.addf %130, %131 : vector<2x8xf32>
    %cst_42 = arith.constant 0.000000e+00 : f32
    %133 = vector.broadcast %cst_42 : f32 to vector<2x8xf32>
    %134 = arith.maximumf %132, %133 : vector<2x8xf32>
    %c192 = arith.constant 192 : index
    %c0_43 = arith.constant 0 : index
    %135 = vector.load %arg5[%c192, %c0_43] : memref<224x128xbf16, #tpu.memory_space<vmem>>, vector<8x8xbf16>
    %136 = arith.extf %135 : vector<8x8xbf16> to vector<8x8xf32>
    %c6 = arith.constant 6 : index
    %c0_44 = arith.constant 0 : index
    %137 = vector.load %arg4[%c6, %c0_44] : memref<8x1280xf32, #tpu.memory_space<vmem>>, vector<1x8xf32>
    %138 = vector.extract_strided_slice %136 {offsets = [0, 0], sizes = [1, 8], strides = [1, 1]} : vector<8x8xf32> to vector<1x8xf32>
    %139 = vector.broadcast %138 : vector<1x8xf32> to vector<2x8xf32>
    %140 = arith.mulf %134, %139 : vector<2x8xf32>
    %cst_45 = arith.constant dense<0.000000e+00> : vector<2xf32>
    %141 = vector.multi_reduction <add>, %140, %cst_45 [1] : vector<2x8xf32> to vector<2xf32>
    %142 = vector.shape_cast %141 : vector<2xf32> to vector<2x1xf32>
    %143 = vector.extract_strided_slice %136 {offsets = [1, 0], sizes = [1, 8], strides = [1, 1]} : vector<8x8xf32> to vector<1x8xf32>
    %144 = vector.broadcast %143 : vector<1x8xf32> to vector<2x8xf32>
    %145 = arith.mulf %134, %144 : vector<2x8xf32>
    %cst_46 = arith.constant dense<0.000000e+00> : vector<2xf32>
    %146 = vector.multi_reduction <add>, %145, %cst_46 [1] : vector<2x8xf32> to vector<2xf32>
    %147 = vector.shape_cast %146 : vector<2xf32> to vector<2x1xf32>
    %148 = vector.extract_strided_slice %136 {offsets = [2, 0], sizes = [1, 8], strides = [1, 1]} : vector<8x8xf32> to vector<1x8xf32>
    %149 = vector.broadcast %148 : vector<1x8xf32> to vector<2x8xf32>
    %150 = arith.mulf %134, %149 : vector<2x8xf32>
    %cst_47 = arith.constant dense<0.000000e+00> : vector<2xf32>
    %151 = vector.multi_reduction <add>, %150, %cst_47 [1] : vector<2x8xf32> to vector<2xf32>
    %152 = vector.shape_cast %151 : vector<2xf32> to vector<2x1xf32>
    %153 = vector.extract_strided_slice %136 {offsets = [3, 0], sizes = [1, 8], strides = [1, 1]} : vector<8x8xf32> to vector<1x8xf32>
    %154 = vector.broadcast %153 : vector<1x8xf32> to vector<2x8xf32>
    %155 = arith.mulf %134, %154 : vector<2x8xf32>
    %cst_48 = arith.constant dense<0.000000e+00> : vector<2xf32>
    %156 = vector.multi_reduction <add>, %155, %cst_48 [1] : vector<2x8xf32> to vector<2xf32>
    %157 = vector.shape_cast %156 : vector<2xf32> to vector<2x1xf32>
    %158 = vector.extract_strided_slice %136 {offsets = [4, 0], sizes = [1, 8], strides = [1, 1]} : vector<8x8xf32> to vector<1x8xf32>
    %159 = vector.broadcast %158 : vector<1x8xf32> to vector<2x8xf32>
    %160 = arith.mulf %134, %159 : vector<2x8xf32>
    %cst_49 = arith.constant dense<0.000000e+00> : vector<2xf32>
    %161 = vector.multi_reduction <add>, %160, %cst_49 [1] : vector<2x8xf32> to vector<2xf32>
    %162 = vector.shape_cast %161 : vector<2xf32> to vector<2x1xf32>
    %163 = vector.extract_strided_slice %136 {offsets = [5, 0], sizes = [1, 8], strides = [1, 1]} : vector<8x8xf32> to vector<1x8xf32>
    %164 = vector.broadcast %163 : vector<1x8xf32> to vector<2x8xf32>
    %165 = arith.mulf %134, %164 : vector<2x8xf32>
    %cst_50 = arith.constant dense<0.000000e+00> : vector<2xf32>
    %166 = vector.multi_reduction <add>, %165, %cst_50 [1] : vector<2x8xf32> to vector<2xf32>
    %167 = vector.shape_cast %166 : vector<2xf32> to vector<2x1xf32>
    %168 = vector.extract_strided_slice %136 {offsets = [6, 0], sizes = [1, 8], strides = [1, 1]} : vector<8x8xf32> to vector<1x8xf32>
    %169 = vector.broadcast %168 : vector<1x8xf32> to vector<2x8xf32>
    %170 = arith.mulf %134, %169 : vector<2x8xf32>
    %cst_51 = arith.constant dense<0.000000e+00> : vector<2xf32>
    %171 = vector.multi_reduction <add>, %170, %cst_51 [1] : vector<2x8xf32> to vector<2xf32>
    %172 = vector.shape_cast %171 : vector<2xf32> to vector<2x1xf32>
    %173 = vector.extract_strided_slice %136 {offsets = [7, 0], sizes = [1, 8], strides = [1, 1]} : vector<8x8xf32> to vector<1x8xf32>
    %174 = vector.broadcast %173 : vector<1x8xf32> to vector<2x8xf32>
    %175 = arith.mulf %134, %174 : vector<2x8xf32>
    %cst_52 = arith.constant dense<0.000000e+00> : vector<2xf32>
    %176 = vector.multi_reduction <add>, %175, %cst_52 [1] : vector<2x8xf32> to vector<2xf32>
    %177 = vector.shape_cast %176 : vector<2xf32> to vector<2x1xf32>
    %178 = tpu.concatenate %142, %147, %152, %157, %162, %167, %172, %177 in 1 : vector<2x1xf32>, vector<2x1xf32>, vector<2x1xf32>, vector<2x1xf32>, vector<2x1xf32>, vector<2x1xf32>, vector<2x1xf32>, vector<2x1xf32> -> vector<2x8xf32>
    %179 = vector.broadcast %137 : vector<1x8xf32> to vector<2x8xf32>
    %180 = arith.addf %178, %179 : vector<2x8xf32>
    %cst_53 = arith.constant 0.000000e+00 : f32
    %181 = vector.broadcast %cst_53 : f32 to vector<2x8xf32>
    %182 = arith.maximumf %180, %181 : vector<2x8xf32>
    %c208 = arith.constant 208 : index
    %c0_54 = arith.constant 0 : index
    %183 = vector.load %arg5[%c208, %c0_54] : memref<224x128xbf16, #tpu.memory_space<vmem>>, vector<2x8xbf16>
    %184 = arith.extf %183 : vector<2x8xbf16> to vector<2x8xf32>
    %c7 = arith.constant 7 : index
    %c0_55 = arith.constant 0 : index
    %185 = vector.load %arg4[%c7, %c0_55] : memref<8x1280xf32, #tpu.memory_space<vmem>>, vector<1x2xf32>
    %186 = vector.extract_strided_slice %184 {offsets = [0, 0], sizes = [1, 8], strides = [1, 1]} : vector<2x8xf32> to vector<1x8xf32>
    %187 = vector.broadcast %186 : vector<1x8xf32> to vector<2x8xf32>
    %188 = arith.mulf %182, %187 : vector<2x8xf32>
    %cst_56 = arith.constant dense<0.000000e+00> : vector<2xf32>
    %189 = vector.multi_reduction <add>, %188, %cst_56 [1] : vector<2x8xf32> to vector<2xf32>
    %190 = vector.shape_cast %189 : vector<2xf32> to vector<2x1xf32>
    %191 = vector.extract_strided_slice %184 {offsets = [1, 0], sizes = [1, 8], strides = [1, 1]} : vector<2x8xf32> to vector<1x8xf32>
    %192 = vector.broadcast %191 : vector<1x8xf32> to vector<2x8xf32>
    %193 = arith.mulf %182, %192 : vector<2x8xf32>
    %cst_57 = arith.constant dense<0.000000e+00> : vector<2xf32>
    %194 = vector.multi_reduction <add>, %193, %cst_57 [1] : vector<2x8xf32> to vector<2xf32>
    %195 = vector.shape_cast %194 : vector<2xf32> to vector<2x1xf32>
    %196 = tpu.concatenate %190, %195 in 1 : vector<2x1xf32>, vector<2x1xf32> -> vector<2x2xf32>
    %197 = vector.broadcast %185 : vector<1x2xf32> to vector<2x2xf32>
    %198 = arith.addf %196, %197 : vector<2x2xf32>
    %cst_58 = arith.constant dense<0xFF800000> : vector<2xf32>
    %199 = vector.multi_reduction <maximumf>, %198, %cst_58 [1] : vector<2x2xf32> to vector<2xf32>
    %200 = vector.shape_cast %199 : vector<2xf32> to vector<2x1xf32>
    %201 = vector.broadcast %200 : vector<2x1xf32> to vector<2x2xf32>
    %202 = arith.subf %198, %201 : vector<2x2xf32>
    %203 = math.exp %202 : vector<2x2xf32>
    %cst_59 = arith.constant dense<0.000000e+00> : vector<2xf32>
    %204 = vector.multi_reduction <add>, %203, %cst_59 [1] : vector<2x2xf32> to vector<2xf32>
    %205 = vector.shape_cast %204 : vector<2xf32> to vector<2x1xf32>
    %206 = tpu.reciprocal %205 {approx = true} : vector<2x1xf32> -> vector<2x1xf32>
    %207 = vector.broadcast %206 : vector<2x1xf32> to vector<2x2xf32>
    %208 = arith.mulf %203, %207 : vector<2x2xf32>
    %c0_60 = arith.constant 0 : index
    %c0_61 = arith.constant 0 : index
    %209 = vector.load %arg6[%c0_60, %c0_61] : memref<2x2xf32, #tpu.memory_space<vmem>>, vector<2x2xf32>
    tpu.vector_store %arg6[%c0_60, %c0_61], %208 {strides = array<i32>} : memref<2x2xf32, #tpu.memory_space<vmem>>, vector<2x2xf32>,
    return
  }
}

</mosaic_0001>

<bundles_post_ra>
// kernel: tpu_custom_call.1
= control target key start
LH: loop header
LB: loop body
LE: loop exit
PB: predicated region body
PF: predicated region fallthrough
CT: control target
= control target key end

     0   :  { %11 = vsyncpa [#allocation3], 0  ;;  %s2594_s0 = inlined_call_operand.vmem [shape: f32[2,3,256], index: 0, kind: input, shape index: {}]   ;;  %s2595_s1 = inlined_call_operand.vmem [shape: f32[2,2], index: 1, kind: input, shape index: {}]   ;;  %s2596_s2 = inlined_call_operand.hbm [shape: bf16[32,1280], index: 2, kind: input, shape index: {}]   ;;  %s2597_s3 = inlined_call_operand.hbm [shape: s8[1280,256], index: 3, kind: input, shape index: {}]   ;;  %s2598_s4 = inlined_call_operand.hbm [shape: f32[8,1280], index: 4, kind: input, shape index: {}]   ;;  %s2599_s5 = inlined_call_operand.hbm [shape: bf16[224,128], index: 5, kind: input, shape index: {}]   ;;  %s2600_s6 = inlined_call_operand.hbm [shape: f32[2,2], index: 6, kind: output, shape index: {}]  }
   0x1   :  { %12 = vsyncpa [#allocation6], 0 }
   0x2   :  { %13 = vsyncpa [#allocation9], 0 }
   0x3   :  { %14 = vsyncpa [#allocation4], 0  ;;  %s2139_s21 = smov [#allocation5]   ;;  %s2021_s25 = scalar_lea.hbm %s2597_s3, 10240 }
   0x4   :  { %s36_s22 = sshll.u32 %s2139_s21, 4  ;;  %p2022_p0 = scmp.ne.s32.totalorder %s2597_s3, %s2021_s25  ;;  %s37_s22 = int_to_ptr.vmem [resolvable:$true] %s36_s22 }
   0x5   :  { %p2025_p1 = scmp.lt.u32.totalorder %s2021_s25, %s2597_s3 }
   0x7   :  { %p2027_p2 = pnand %p2025_p1, %p2022_p0 }
   0x9   :  { %2030 = shalt.err (!%p2027_p2)
}
   0xa   :  { %s2031_s30 = scalar_lea.vmem %s37_s22, 10240  ;;  %p2036_p4 = scmp.lt.s32.totalorder %s37_s22, %s37_s22 }
   0xb   :  { %p2032_p3 = scmp.ne.s32.totalorder %s37_s22, %s2031_s30  ;;  %p2037_p5 = scmp.lt.s32.totalorder %s2031_s30, %s2031_s30 }
   0xd   :  { %p2038_p6 = por %p2037_p5, %p2036_p4 }
   0xf   :  { %p2039_p7 = pnand %p2038_p6, %p2032_p3 }
  0x11   :  { %2042 = shalt.err (!%p2039_p7)
}
  0x12   :  { %s2140_s7 = smov 256   ;;  %s2141_s8 = smov 16  }
  0x13   :  { %42 = dma.hbm_to_vmem [thread:$0]  %s2597_s3, 10240, %s37_s22, [#allocation6], %s2140_s7, %s2140_s7, %s2141_s8  }
  0x14   :  { %s2142_s11 = smov [#allocation2]   ;;  %s2043_s15 = scalar_lea.hbm %s2596_s2, 2560 }
  0x15   :  { %s24_s12 = sshll.u32 %s2142_s11, 4  ;;  %p2044_p8 = scmp.ne.s32.totalorder %s2596_s2, %s2043_s15  ;;  %s25_s12 = int_to_ptr.vmem [resolvable:$true] %s24_s12 }
  0x16   :  { %p2047_p9 = scmp.lt.u32.totalorder %s2043_s15, %s2596_s2 }
  0x18   :  { %p2049_p10 = pnand %p2047_p9, %p2044_p8 }
  0x1a   :  { %2052 = shalt.err (!%p2049_p10)
}
  0x1b   :  { %s2053_s20 = scalar_lea.vmem %s25_s12, 2560  ;;  %p2058_p12 = scmp.lt.s32.totalorder %s25_s12, %s25_s12 }
  0x1c   :  { %p2054_p11 = scmp.ne.s32.totalorder %s25_s12, %s2053_s20  ;;  %p2059_p13 = scmp.lt.s32.totalorder %s2053_s20, %s2053_s20 }
  0x1e   :  { %p2060_p0 = por %p2059_p13, %p2058_p12 }
  0x20   :  { %p2061_p1 = pnand %p2060_p0, %p2054_p11 }
  0x22   :  { %2064 = shalt.err (!%p2061_p1)
}
  0x23   :  { %s2143_s3 = smov 640   ;;  %s2144_s21 = smov 40  }
  0x24   :  { %30 = dma.hbm_to_vmem [thread:$0]  %s2596_s2, 2560, %s25_s12, [#allocation3], %s2143_s3, %s2143_s3, %s2144_s21  }
  0x25   :  { %s2145_s24 = smov [#allocation7]   ;;  %s2146_s26 = smov [#allocation8]  }
  0x26   :  { %s49_s25 = sshll.u32 %s2145_s24, 4  ;;  %s58_s27 = sshll.u32 %s2146_s26, 4  ;;  %s50_s25 = int_to_ptr.vmem [resolvable:$true] %s49_s25  ;;  %s2216_s27 = int_to_ptr.vmem [resolvable:$true] %s58_s27 }
  0x27   :  { %s2065_s30 = scalar_lea.hbm %s2598_s4, 1280 }
  0x28   :  { %p2066_p2 = scmp.ne.s32.totalorder %s2598_s4, %s2065_s30  ;;  %p2069_p3 = scmp.lt.u32.totalorder %s2065_s30, %s2598_s4 }
  0x2a   :  { %p2071_p4 = pnand %p2069_p3, %p2066_p2 }
  0x2c   :  { %2074 = shalt.err (!%p2071_p4)
}
  0x2d   :  { %s2075_s2 = scalar_lea.vmem %s50_s25, 1280  ;;  %p2080_p6 = scmp.lt.s32.totalorder %s50_s25, %s50_s25 }
  0x2e   :  { %p2076_p5 = scmp.ne.s32.totalorder %s50_s25, %s2075_s2  ;;  %p2081_p7 = scmp.lt.s32.totalorder %s2075_s2, %s2075_s2 }
  0x30   :  { %p2082_p8 = por %p2081_p7, %p2080_p6 }
  0x32   :  { %p2083_p9 = pnand %p2082_p8, %p2076_p5 }
  0x34   :  { %2086 = shalt.err (!%p2083_p9)
}
  0x35   :  { %52 = dma.hbm_to_vmem [thread:$0]  %s2598_s4, 1280, %s50_s25, [#allocation6]  }
  0x36   :  { %s2087_s15 = scalar_lea.hbm %s2599_s5, 1792 }
  0x37   :  { %p2088_p10 = scmp.ne.s32.totalorder %s2599_s5, %s2087_s15  ;;  %p2091_p11 = scmp.lt.u32.totalorder %s2087_s15, %s2599_s5 }
  0x39   :  { %p2093_p12 = pnand %p2091_p11, %p2088_p10 }
  0x3b   :  { %2096 = shalt.err (!%p2093_p12)
}
  0x3c   :  { %s2097_s20 = scalar_lea.vmem %s2216_s27, 1792  ;;  %p2102_p0 = scmp.lt.s32.totalorder %s2216_s27, %s2216_s27 }
  0x3d   :  { %p2098_p13 = scmp.ne.s32.totalorder %s2216_s27, %s2097_s20  ;;  %p2103_p1 = scmp.lt.s32.totalorder %s2097_s20, %s2097_s20 }
  0x3f   :  { %p2104_p2 = por %p2103_p1, %p2102_p0 }
  0x41   :  { %p2105_p3 = pnand %p2104_p2, %p2098_p13 }
  0x43   :  { %2108 = shalt.err (!%p2105_p3)
}
  0x44   :  { %s2147_s4 = smov 64   ;;  %s2148_s3 = smov 4  }
  0x45   :  { %64 = dma.hbm_to_vmem [thread:$0]  %s2599_s5, 1792, %s2216_s27, [#allocation9], %s2147_s4, %s2147_s4, %s2148_s3  }
  0x46   :  { %2131 = dma.done.wait [#allocation3], 2560  }
  0x47   :  { %2132 = vsyncadd [#allocation3], 4294964736 }
  0x48   :  { %2133 = dma.done.wait [#allocation6], 11520  }
  0x49   :  { %2134 = vsyncadd [#allocation6], 4294955776 }
  0x4a   :  { %2135 = dma.done.wait [#allocation9], 1792  }
  0x4b   :  { %2136 = vsyncadd [#allocation9], 4294965504  ;;  %v2601_v0 = vmov 0   ;;  %v1840_v1 = vld [vmem:[#allocation8 + $0x48] sm:$0xff]   ;;  %v1839_v2 = vld [vmem:[#allocation8 + $0x40] sm:$0xff]   ;;  %v2150_v9 = vmov 1   ;;  %v2603_v12 = vlaneseq }
  0x4c   :  { %1943 = vset.pattern.permute.xlu1 %v2601_v0  ;;  %1931 = vset.pattern.permute.xlu0 %v2601_v0  ;;  %v1837_v3 = vunpack.c.l.bf16 %v1840_v1  ;;  %v1838_v4 = vunpack.c.h.bf16 %v1840_v1  ;;  %v1833_v5 = vunpack.c.l.bf16 %v1839_v2  ;;  %v1834_v6 = vunpack.c.h.bf16 %v1839_v2  ;;  %v78_v16 = vld [vmem:[%s2594_s0] sm:$0x77]  ;;  %v79_v17 = vld [vmem:[%s2594_s0 + $0x8] sm:$0x77]  ;;  %s2155_s0 = smov 2  }
  0x4d   :  { %705 = vmatprep.mubr.bf16.mxu0 %v2601_v0  ;;  %746 = vmatprep.mubr.bf16.mxu1 %v2601_v0  ;;  %v2151_v10 = vmov 2   ;;  %v2152_v11 = vmov 3   ;;  %v2254_v13 = vshrl.u32 %v2603_v12, 7  ;;  %vm531_vm0 = vcmask 130112  }
  0x4e   :  { %v1944_v7 = vpack.i.bf16 %v1838_v4, %v1837_v3  ;;  %v1932_v8 = vpack.i.bf16 %v1834_v6, %v1833_v5  ;;  %vm538_vm1 = vcmask 195712   ;;  %vm545_vm2 = vcmask 261312  }
  0x4f   :  { %v2257_v14 = vsub.s32 0, %v2254_v13  ;;  %v2260_v15 = vsub.s32 4, %v2254_v13  ;;  %v2269_v18 = vsub.s32 1, %v2254_v13  ;;  %v2272_v19 = vsub.s32 5, %v2254_v13 }
  0x50   :  { %1945 = vperm.xlu1 %1943, %v1944_v7   ;;  %1933 = vperm.xlu0 %1931, %v1932_v8   ;;  %v2275_v20 = vsub.s32 2, %v2254_v13  ;;  %v2278_v21 = vsub.s32 6, %v2254_v13  ;;  %vm566_vm3 = vcmask 1041409   ;;  %vm669_vm4 = vcmask 261120  }
  0x51   :  { %v93_v22 = vrot.slane %v78_v16, %v2257_v14  ;;  %v97_v23 = vrot.slane %v78_v16, %v2260_v15  ;;  %v101_v24 = vrot.slane %v79_v17, %v2257_v14  ;;  %v105_v25 = vrot.slane %v79_v17, %v2260_v15 }
  0x52   :  { %2606 = vst [vmem:[#allocation15_spill] sm:$0xff] %v2278_v21  ;;  %v165_v26 = vrot.slane %v78_v16, %v2269_v18  ;;  %v169_v27 = vrot.slane %v78_v16, %v2272_v19  ;;  %v173_v28 = vrot.slane %v79_v17, %v2269_v18  ;;  %v177_v29 = vrot.slane %v79_v17, %v2272_v19 }
  0x53   :  { %v249_v30 = vrot.slane %v78_v16, %v2275_v20  ;;  %v253_v31 = vrot.slane %v78_v16, %v2278_v21  ;;  %v257_v32 = vrot.slane %v79_v17, %v2275_v20  ;;  %v113_v34 = vrot.slane %v93_v22, %v2257_v14 }
  0x54   :  { %1949 = vset.pattern.permute.xlu1 %v2150_v9  ;;  %1937 = vset.pattern.permute.xlu0 %v2150_v9  ;;  %v117_v35 = vrot.slane %v97_v23, %v2257_v14  ;;  %v121_v36 = vrot.slane %v101_v24, %v2257_v14  ;;  %v261_v38 = vrot.slane %v79_v17, %v2278_v21  ;;  %vm2154_vm5 = vmmov 0  }
  0x55   :  { %1951 = vperm.xlu1 %1949, %v1944_v7   ;;  %1939 = vperm.xlu0 %1937, %v1932_v8   ;;  %v125_v41 = vrot.slane %v105_v25, %v2257_v14  ;;  %v185_v42 = vrot.slane %v165_v26, %v2269_v18  ;;  %v189_v45 = vrot.slane %v169_v27, %v2269_v18  ;;  %vm1566_vm6 = vcmask 517120  }
  0x56   :  { %v193_v46 = vrot.slane %v173_v28, %v2269_v18  ;;  %v197_v47 = vrot.slane %v177_v29, %v2269_v18  ;;  %v2301_v48 = vrot.slane %v249_v30, %v2275_v20  ;;  %v2304_v49 = vrot.slane %v253_v31, %v2275_v20 }
  0x57   :  { %v2307_v50 = vrot.slane %v257_v32, %v2275_v20  ;;  %v2312_v54 = vrot.slane %v261_v38, %v2275_v20  ;;  %vm1578_vm7 = vcmask 7168   ;;  %vm1586_vm8 = vcmask 15360  }
  0x58   :  { %vm1596_vm9 = vcmask 25600   ;;  %vm1658_vm10 = vcmask 23552   ;;  %vm1660_vm11 = vcmask 31744   ;;  %vm1662_vm12 = vcmask 39936  }
  0x59   :  { %1955 = vset.pattern.permute.xlu1 %v2151_v10  ;;  %1961 = vset.pattern.permute.xlu0 %v2151_v10  ;;  %vm1664_vm13 = vcmask 48128   ;;  %vm1666_vm14 = vcmask 56320   ;;  %vm1678_vm15 = vcmask 58368  }
  0x5a   :  { %1957 = vperm.xlu1 %1955, %v1932_v8   ;;  %1963 = vperm.xlu0 %1961, %v1944_v7  }
  0x5e   :  { %1967 = vset.pattern.permute.xlu1 %v2152_v11  ;;  %1978 = vset.pattern.permute.xlu0 %v2152_v11 }
  0x5f   :  { %1969 = vperm.xlu1 %1967, %v1932_v8  }
  0x63   :  { %1974 = vperm.xlu1 %1967, %v1944_v7  }
  0xcf   :  { %v1946_v33 = vpop.permute.xlu1 %1945  ;;  %v1934_v37 = vpop.permute.xlu0 %1933 }
  0xd0   :  { %v1948_v39 = vunpack.i.h.bf16 %v1946_v33  ;;  %v1947_v40 = vunpack.i.l.bf16 %v1946_v33  ;;  %v1936_v43 = vunpack.i.h.bf16 %v1934_v37  ;;  %v1935_v44 = vunpack.i.l.bf16 %v1934_v37 }
  0xd2   :  { %v150_v51 = vmul.f32 %v1947_v40, %v113_v34  ;;  %v151_v52 = vmul.f32 %v1947_v40, %v117_v35  ;;  %v2309_v53 = vmul.f32 %v1948_v39, %v113_v34  ;;  %v2314_v55 = vmul.f32 %v1948_v39, %v117_v35 }
  0xd3   :  { %v2316_v56 = vmul.f32 %v1947_v40, %v121_v36  ;;  %v2318_v57 = vmul.f32 %v1947_v40, %v125_v41  ;;  %v2320_v58 = vmul.f32 %v1948_v39, %v121_v36  ;;  %v2322_v61 = vmul.f32 %v1948_v39, %v125_v41 }
  0xd4   :  { %v1952_v59 = vpop.permute.xlu1 %1951  ;;  %v1940_v60 = vpop.permute.xlu0 %1939  ;;  %v146_v62 = vmul.f32 %v1935_v44, %v113_v34  ;;  %v147_v63 = vmul.f32 %v1935_v44, %v117_v35  ;;  %v148_v1 = vmul.f32 %v1936_v43, %v113_v34  ;;  %v149_v6 = vmul.f32 %v1936_v43, %v117_v35 }
  0xd5   :  { %v1954_v2 = vunpack.i.h.bf16 %v1952_v59  ;;  %v1953_v3 = vunpack.i.l.bf16 %v1952_v59  ;;  %v1942_v4 = vunpack.i.h.bf16 %v1940_v60  ;;  %v1941_v5 = vunpack.i.l.bf16 %v1940_v60 }
  0xd6   :  { %v154_v7 = vmul.f32 %v1935_v44, %v121_v36  ;;  %v155_v8 = vmul.f32 %v1935_v44, %v125_v41  ;;  %v2324_v9 = vmul.f32 %v1936_v43, %v121_v36  ;;  %v2326_v10 = vmul.f32 %v1936_v43, %v125_v41 }
  0xd7   :  { %v218_v11 = vmul.f32 %v1953_v3, %v185_v42  ;;  %v219_v16 = vmul.f32 %v1953_v3, %v189_v45  ;;  %v2328_v17 = vmul.f32 %v1954_v2, %v185_v42  ;;  %v2330_v22 = vmul.f32 %v1954_v2, %v189_v45 }
  0xd8   :  { %v2332_v23 = vmul.f32 %v1953_v3, %v193_v46  ;;  %v2334_v24 = vmul.f32 %v1953_v3, %v197_v47  ;;  %v2336_v25 = vmul.f32 %v1954_v2, %v193_v46  ;;  %v214_v28 = vmul.f32 %v1941_v5, %v185_v42 }
  0xd9   :  { %v1958_v26 = vpop.permute.xlu1 %1957  ;;  %v1964_v27 = vpop.permute.xlu0 %1963  ;;  %v215_v29 = vmul.f32 %v1941_v5, %v189_v45  ;;  %v216_v30 = vmul.f32 %v1942_v4, %v185_v42  ;;  %v217_v31 = vmul.f32 %v1942_v4, %v189_v45  ;;  %v2338_v32 = vmul.f32 %v1954_v2, %v197_v47 }
  0xda   :  { %v222_v33 = vmul.f32 %v1941_v5, %v193_v46  ;;  %v223_v34 = vmul.f32 %v1941_v5, %v197_v47  ;;  %v2340_v35 = vmul.f32 %v1942_v4, %v193_v46  ;;  %v2342_v36 = vmul.f32 %v1942_v4, %v197_v47 }
  0xdb   :  { %v2344_v37 = vunpack.i.h.bf16 %v1958_v26  ;;  %v1959_v38 = vunpack.i.l.bf16 %v1958_v26  ;;  %v1965_v39 = vunpack.i.l.bf16 %v1964_v27  ;;  %v232_v40 = vadd.f32 %v216_v30, %v148_v1 }
  0xdc   :  { %v233_v41 = vadd.f32 %v217_v31, %v149_v6  ;;  %v230_v43 = vadd.f32 %v214_v28, %v146_v62  ;;  %v231_v44 = vadd.f32 %v215_v29, %v147_v63  ;;  %v2352_v60 = vunpack.i.h.bf16 %v1964_v27 }
  0xdd   :  { %v300_v42 = vmul.f32 %v2344_v37, %v2301_v48  ;;  %v301_v45 = vmul.f32 %v2344_v37, %v2304_v49  ;;  %v298_v46 = vmul.f32 %v1959_v38, %v2301_v48  ;;  %v299_v47 = vmul.f32 %v1959_v38, %v2304_v49 }
  0xde   :  { %v1970_v59 = vpop.permute.xlu1 %1969  ;;  %v234_v1 = vadd.f32 %v218_v11, %v150_v51  ;;  %v235_v6 = vadd.f32 %v219_v16, %v151_v52  ;;  %v302_v26 = vmul.f32 %v1965_v39, %v2301_v48  ;;  %v303_v28 = vmul.f32 %v1965_v39, %v2304_v49 }
  0xdf   :  { %v2354_v2 = vunpack.i.h.bf16 %v1970_v59  ;;  %v1971_v3 = vunpack.i.l.bf16 %v1970_v59  ;;  %v316_v4 = vadd.f32 %v300_v42, %v232_v40  ;;  %v317_v62 = vadd.f32 %v301_v45, %v233_v41 }
  0xe0   :  { %v314_v63 = vadd.f32 %v298_v46, %v230_v43  ;;  %v315_v5 = vadd.f32 %v299_v47, %v231_v44  ;;  %v238_v29 = vadd.f32 %v222_v33, %v154_v7  ;;  %v318_v59 = vadd.f32 %v302_v26, %v234_v1 }
  0xe1   :  { %v348_v31 = vadd.f32 %v2354_v2, %v316_v4  ;;  %v349_v27 = vadd.f32 %v2354_v2, %v317_v62  ;;  %v319_v51 = vadd.f32 %v303_v28, %v235_v6  ;;  %v239_v11 = vadd.f32 %v223_v34, %v155_v8 }
  0xe2   :  { %v1975_v30 = vpop.permute.xlu1 %1974  ;;  %v346_v0 = vadd.f32 %v1971_v3, %v314_v63  ;;  %v347_v12 = vadd.f32 %v1971_v3, %v315_v5  ;;  %v306_v42 = vmul.f32 %v1959_v38, %v2307_v50  ;;  %v307_v7 = vmul.f32 %v1959_v38, %v2312_v54 }
  0xe3   :  { %v1976_v21 = vunpack.i.l.bf16 %v1975_v30  ;;  %v364_v40 = vmax.f32 %v348_v31, 0.0  ;;  %v365_v41 = vmax.f32 %v349_v27, 0.0  ;;  %v1977_v28 = vunpack.i.h.bf16 %v1975_v30 }
  0xe4   :  { %v362_v43 = vmax.f32 %v346_v0, 0.0  ;;  %v363_v52 = vmax.f32 %v347_v12, 0.0  ;;  %v322_v63 = vadd.f32 %v306_v42, %v238_v29  ;;  %v323_v1 = vadd.f32 %v307_v7, %v239_v11 }
  0xe5   :  { %v350_v16 = vadd.f32 %v1976_v21, %v318_v59  ;;  %v351_v44 = vadd.f32 %v1976_v21, %v319_v51  ;;  %v380_v33 = vmin.f32 %v364_v40, 6.0  ;;  %v381_v45 = vmin.f32 %v365_v41, 6.0 }
  0xe6   :  { %v378_v46 = vmin.f32 %v362_v43, 6.0  ;;  %v379_v47 = vmin.f32 %v363_v52, 6.0  ;;  %v242_v0 = vadd.f32 %v2332_v23, %v2316_v56  ;;  %v243_v12 = vadd.f32 %v2334_v24, %v2318_v57 }
  0xe7   :  { %v366_v4 = vmax.f32 %v350_v16, 0.0  ;;  %v367_v62 = vmax.f32 %v351_v44, 0.0  ;;  %v397_v5 = vadd.f32 %v381_v45, %v380_v33  ;;  %v354_v26 = vadd.f32 %v1971_v3, %v322_v63 }
  0xe8   :  { %v394_v8 = vadd.f32 %v379_v47, %v378_v46  ;;  %v355_v38 = vadd.f32 %v1971_v3, %v323_v1  ;;  %v310_v31 = vmul.f32 %v1965_v39, %v2307_v50  ;;  %v311_v29 = vmul.f32 %v1965_v39, %v2312_v54 }
  0xe9   :  { %v382_v34 = vmin.f32 %v366_v4, 6.0  ;;  %v383_v6 = vmin.f32 %v367_v62, 6.0  ;;  %398 = vadd.xlane.f32.xlu1 %v397_v5  ;;  %v240_v27 = vadd.f32 %v2340_v35, %v2324_v9  ;;  %v370_v51 = vmax.f32 %v354_v26, 0.0 }
  0xea   :  { %395 = vadd.xlane.f32.xlu0 %v394_v8  ;;  %v371_v56 = vmax.f32 %v355_v38, 0.0  ;;  %v241_v57 = vadd.f32 %v2342_v36, %v2326_v10  ;;  %v326_v23 = vadd.f32 %v310_v31, %v242_v0  ;;  %v327_v24 = vadd.f32 %v311_v29, %v243_v12  ;;  %v1981_v31 = vld [vmem:[#allocation2] ss:$40 sps:$4 sm:$0xff]   ;;  %v1982_v29 = vld [vmem:[#allocation2 + $0xc] ss:$40 sps:$4 sm:$0xff]  }
  0xeb   :  { %v400_v59 = vadd.f32 %v383_v6, %v382_v34  ;;  %v308_v3 = vmul.f32 %v2344_v37, %v2307_v50  ;;  %v309_v30 = vmul.f32 %v2344_v37, %v2312_v54  ;;  %v386_v11 = vmin.f32 %v370_v51, 6.0  ;;  %714 = vmatprep.subr.bf16.mxu1 %v1982_v29  ;;  %v1988_v51 = vld [vmem:[#allocation2 + $0x5c] ss:$40 sps:$4 sm:$0xff]  }
  0xec   :  { %v387_v40 = vmin.f32 %v371_v56, 6.0  ;;  %v236_v39 = vadd.f32 %v2328_v17, %v2309_v53  ;;  %v237_v9 = vadd.f32 %v2330_v22, %v2314_v55  ;;  %v358_v35 = vadd.f32 %v1976_v21, %v326_v23  ;;  %v1990_v56 = vld [vmem:[#allocation2 + $0x58] ss:$40 sps:$4 sm:$0xff]   ;;  %v1996_v23 = vld [vmem:[#allocation2 + $0x1c] ss:$40 sps:$4 sm:$0xff]  }
  0xed   :  { %401 = vadd.xlane.f32.xlu1 %v400_v59  ;;  %v359_v41 = vadd.f32 %v1976_v21, %v327_v24  ;;  %v324_v10 = vadd.f32 %v308_v3, %v240_v27  ;;  %v325_v36 = vadd.f32 %v309_v30, %v241_v57  ;;  %v304_v52 = vmul.f32 %v2352_v60, %v2301_v48  ;;  %v1984_v27 = vld [vmem:[#allocation2 + $0x8] ss:$40 sps:$4 sm:$0xff]   ;;  %v1985_v59 = vld [vmem:[#allocation2 + $0x54] ss:$40 sps:$4 sm:$0xff]  }
  0xee   :  { %v406_v43 = vadd.f32 %v387_v40, %v386_v11  ;;  %v305_v37 = vmul.f32 %v2352_v60, %v2304_v49  ;;  %v244_v16 = vadd.f32 %v2336_v25, %v2320_v58  ;;  %v374_v44 = vmax.f32 %v358_v35, 0.0  ;;  %715 = vmatpush1.bf16.msra.mxu1 %v1984_v27  ;;  %v1993_v57 = vld [vmem:[#allocation2 + $0x14] ss:$40 sps:$4 sm:$0xff]   ;;  %v1991_v27 = vld [vmem:[#allocation2 + $0x10] ss:$40 sps:$4 sm:$0xff]  }
  0xef   :  { %v375_v53 = vmax.f32 %v359_v41, 0.0  ;;  %v356_v17 = vadd.f32 %v2354_v2, %v324_v10  ;;  %v357_v55 = vadd.f32 %v2354_v2, %v325_v36  ;;  %v320_v21 = vadd.f32 %v304_v52, %v236_v39  ;;  %716 = vmatprep.subr.bf16.mxu1 %v1988_v51  ;;  %v1994_v51 = vld [vmem:[#allocation2 + $0x18] ss:$40 sps:$4 sm:$0xff]  }
  0xf0   :  { %407 = vadd.xlane.f32.xlu0 %v406_v43  ;;  %v321_v22 = vadd.f32 %v305_v37, %v237_v9  ;;  %v245_v42 = vadd.f32 %v2338_v32, %v2322_v61  ;;  %v312_v48 = vmul.f32 %v2352_v60, %v2307_v50  ;;  %v390_v7 = vmin.f32 %v374_v44, 6.0 }
  0xf1   :  { %v391_v49 = vmin.f32 %v375_v53, 6.0  ;;  %v372_v33 = vmax.f32 %v356_v17, 0.0  ;;  %v373_v45 = vmax.f32 %v357_v55, 0.0  ;;  %v352_v58 = vadd.f32 %v1977_v28, %v320_v21 }
  0xf2   :  { %v353_v25 = vadd.f32 %v1977_v28, %v321_v22  ;;  %v313_v46 = vmul.f32 %v2352_v60, %v2312_v54  ;;  %v328_v47 = vadd.f32 %v312_v48, %v244_v16  ;;  %v1979_v60 = vld [vmem:[#allocation2 + $0x4] ss:$40 sps:$4 sm:$0xff]   ;;  %717 = vmatpush1.bf16.msra.mxu1 %v1990_v56  ;;  %v2607_v40 = vlaneseq }
  0xf3   :  { %v412_v2 = vadd.f32 %v391_v49, %v390_v7  ;;  %v388_v4 = vmin.f32 %v372_v33, 6.0  ;;  %v389_v62 = vmin.f32 %v373_v45, 6.0  ;;  %v368_v63 = vmax.f32 %v352_v58, 0.0  ;;  %673 = vmatprep.subr.bf16.mxu0 %v1979_v60  ;;  %796 = vmatprep.subr.bf16.mxu1 %v1996_v23  ;;  %v1999_v56 = vld [vmem:[#allocation2 + $0x64] ss:$40 sps:$4 sm:$0xff]  }
  0xf4   :  { %v369_v1 = vmax.f32 %v353_v25, 0.0  ;;  %v329_v5 = vadd.f32 %v313_v46, %v245_v42  ;;  %v360_v61 = vadd.f32 %v1977_v28, %v328_v47  ;;  %674 = vmatpush1.bf16.msra.mxu0 %v1981_v31  ;;  %v521_v39 = vand.u32 127, %v2607_v40  ;;  %v935_v23 = vld [vmem:[#allocation5 + $0x108] sm:$0xff] }
  0xf5   :  { %413 = vadd.xlane.f32.xlu1 %v412_v2  ;;  %v409_v32 = vadd.f32 %v389_v62, %v388_v4  ;;  %v384_v50 = vmin.f32 %v368_v63, 6.0  ;;  %675 = vmatprep.subr.bf16.mxu0 %v1985_v59  ;;  %v2608_v40 = vmov 0  }
  0xf6   :  { %v385_v8 = vmin.f32 %v369_v1, 6.0  ;;  %v361_v0 = vadd.f32 %v1977_v28, %v329_v5  ;;  %v376_v12 = vmax.f32 %v360_v61, 0.0  ;;  %v1987_v28 = vld [vmem:[#allocation2 + $0x50] ss:$40 sps:$4 sm:$0xff]   ;;  %v526_v36 = vadd.s32 4294967288, %v521_v39 }
  0xf7   :  { %410 = vadd.xlane.f32.xlu0 %v409_v32  ;;  %v533_v37 = vadd.s32 4294967280, %v521_v39  ;;  %v524_v53 = vsub.s32 %v521_v39, %v2254_v13  ;;  %v540_v7 = vadd.s32 4294967272, %v521_v39  ;;  %v934_v39 = vld [vmem:[#allocation5 + $0x100] sm:$0xff] }
  0xf8   :  { %v377_v34 = vmax.f32 %v361_v0, 0.0  ;;  %v403_v6 = vadd.f32 %v385_v8, %v384_v50  ;;  %v392_v26 = vmin.f32 %v376_v12, 6.0  ;;  %676 = vmatpush1.bf16.msra.mxu0 %v1987_v28  ;;  %v529_v21 = vsub.s32 %v526_v36, %v2254_v13 }
  0xf9   :  { %755 = vmatprep.subr.bf16.mxu0 %v1993_v57  ;;  %v536_v49 = vsub.s32 %v533_v37, %v2254_v13  ;;  %v543_v63 = vsub.s32 %v540_v7, %v2254_v13  ;;  %v2002_v57 = vld [vmem:[#allocation2 + $0x6c] ss:$40 sps:$4 sm:$0xff]   ;;  %v1049_v36 = vunpack.c.h.s8.bf16 %v935_v23 }
  0xfa   :  { %v393_v38 = vmin.f32 %v377_v34, 6.0  ;;  %v939_v7 = vld [vmem:[#allocation5 + $0x128] sm:$0xff] }
  0xfb   :  { %404 = vadd.xlane.f32.xlu0 %v403_v6 }
  0xfc   :  { %v415_v54 = vadd.f32 %v393_v38, %v392_v26 }
  0xff   :  { %416 = vadd.xlane.f32.xlu0 %v415_v54 }
 0x176   :  { %v399_v3 = vpop.xlane.xlu1 %398 }
 0x177   :  { %v396_v24 = vpop.xlane.xlu0 %395  ;;  %v420_v11 = vmul.f32 0.00390625, %v399_v3  ;;  %v2000_v3 = vld [vmem:[#allocation2 + $0x68] ss:$40 sps:$4 sm:$0xff]  }
 0x178   :  { %v419_v9 = vmul.f32 0.00390625, %v396_v24  ;;  %v1997_v24 = vld [vmem:[#allocation2 + $0x60] ss:$40 sps:$4 sm:$0xff]  }
 0x17a   :  { %v402_v35 = vpop.xlane.xlu1 %401  ;;  %v432_v43 = vpack.c.bf16 %v420_v11, %v419_v9  ;;  %v1047_v11 = vunpack.c.l.s8.bf16 %v935_v23  ;;  %v2003_v9 = vld [vmem:[#allocation2 + $0x20] ss:$40 sps:$4 sm:$0xff]  }
 0x17b   :  { %v421_v17 = vmul.f32 0.00390625, %v402_v35  ;;  %v2008_v35 = vld [vmem:[#allocation2 + $0x74] ss:$40 sps:$4 sm:$0xff]   ;;  %v911_v23 = vld [vmem:[#allocation5 + $0x48] sm:$0xff] }
 0x17c   :  { %v512_v22 = vunpack.c.l.b16 %v432_v43  ;;  %v513_v42 = vunpack.c.h.b16 %v432_v43  ;;  %v937_v43 = vld [vmem:[#allocation5 + $0x118] sm:$0xff] }
 0x17d   :  { %v408_v30 = vpop.xlane.xlu0 %407 }
 0x17e   :  { %v423_v52 = vmul.f32 0.00390625, %v408_v30  ;;  %v525_v4 = vrot.slane %v512_v22, %v524_v53  ;;  %v530_v62 = vrot.slane %v513_v42, %v529_v21  ;;  %v2005_v30 = vld [vmem:[#allocation2 + $0x24] ss:$40 sps:$4 sm:$0xff]   ;;  %v905_v42 = vld [vmem:[#allocation5 + $0x18] sm:$0xff] }
 0x180   :  { %v532_v12 = vsel %vm531_vm0, %v530_v62, %v525_v4  ;;  %v907_v62 = vld [vmem:[#allocation5 + $0x28] sm:$0xff] }
 0x182   :  { %v414_v48 = vpop.xlane.xlu1 %413 }
 0x183   :  { %v425_v46 = vmul.f32 0.00390625, %v414_v48  ;;  %v1053_v48 = vunpack.c.h.s8.bf16 %v937_v43 }
 0x184   :  { %v411_v41 = vpop.xlane.xlu0 %410 }
 0x185   :  { %v424_v10 = vmul.f32 0.00390625, %v411_v41  ;;  %v1046_v41 = vunpack.c.l.s8.bf16 %v934_v39 }
 0x187   :  { %v434_v16 = vpack.c.bf16 %v424_v10, %v423_v52  ;;  %v903_v10 = vld [vmem:[#allocation5 + $0x8] sm:$0xff]  ;;  %v2006_v52 = vld [vmem:[#allocation2 + $0x70] ss:$40 sps:$4 sm:$0xff]  }
 0x188   :  { %v405_v44 = vpop.xlane.xlu0 %404  ;;  %v983_v37 = vunpack.c.l.s8.bf16 %v903_v10 }
 0x189   :  { %v422_v55 = vmul.f32 0.00390625, %v405_v44  ;;  %v516_v45 = vunpack.c.l.b16 %v434_v16  ;;  %v517_v58 = vunpack.c.h.b16 %v434_v16  ;;  %v902_v16 = vld [vmem:[#allocation5] sm:$0xff]  ;;  %v1048_v44 = vunpack.c.h.s8.bf16 %v934_v39 }
 0x18b   :  { %v433_v33 = vpack.c.bf16 %v422_v55, %v421_v17  ;;  %v550_v32 = vrot.slane %v516_v45, %v524_v53  ;;  %v554_v50 = vrot.slane %v517_v58, %v529_v21  ;;  %v1051_v53 = vunpack.c.l.s8.bf16 %v937_v43  ;;  %v936_v17 = vld [vmem:[#allocation5 + $0x110] sm:$0xff]  ;;  %v913_v43 = vld [vmem:[#allocation5 + $0x58] sm:$0xff] }
 0x18c   :  { %v417_v25 = vpop.xlane.xlu0 %416  ;;  %v982_v55 = vunpack.c.l.s8.bf16 %v902_v16  ;;  %v985_v21 = vunpack.c.h.s8.bf16 %v903_v10  ;;  %v1050_v22 = vunpack.c.l.s8.bf16 %v936_v17  ;;  %v904_v45 = vld [vmem:[#allocation5 + $0x10] sm:$0xff]  ;;  %v1052_v58 = vunpack.c.h.s8.bf16 %v936_v17 }
 0x18d   :  { %v514_v47 = vunpack.c.l.b16 %v433_v33  ;;  %v426_v2 = vmul.f32 0.00390625, %v417_v25  ;;  %v515_v1 = vunpack.c.h.b16 %v433_v33  ;;  %v555_v54 = vsel %vm531_vm0, %v554_v50, %v550_v32  ;;  %v906_v32 = vld [vmem:[#allocation5 + $0x20] sm:$0xff] }
 0x18e   :  { %v987_v33 = vunpack.c.l.s8.bf16 %v905_v42  ;;  %v1055_v25 = vunpack.c.l.s8.bf16 %v939_v7  ;;  %v1001_v10 = vunpack.c.h.s8.bf16 %v911_v23  ;;  %vm1768_vm0 = vcmask 9216  }
 0x18f   :  { %v537_v5 = vrot.slane %v514_v47, %v536_v49  ;;  %v435_v61 = vpack.c.bf16 %v426_v2, %v425_v46  ;;  %v544_v34 = vrot.slane %v515_v1, %v543_v63  ;;  %v938_v46 = vld [vmem:[#allocation5 + $0x120] sm:$0xff]  ;;  %v986_v47 = vunpack.c.l.s8.bf16 %v904_v45  ;;  %v941_v1 = vld [vmem:[#allocation5 + $0x138] sm:$0xff] }
 0x190   :  { %v989_v2 = vunpack.c.h.s8.bf16 %v905_v42  ;;  %v1054_v4 = vunpack.c.l.s8.bf16 %v938_v46  ;;  %v1056_v50 = vunpack.c.h.s8.bf16 %v938_v46 }
 0x191   :  { %v518_v8 = vunpack.c.l.b16 %v435_v61  ;;  %v519_v0 = vunpack.c.h.b16 %v435_v61  ;;  %v539_v6 = vsel %vm538_vm1, %v537_v5, %v532_v12  ;;  %v988_v5 = vunpack.c.h.s8.bf16 %v904_v45  ;;  %v917_v45 = vld [vmem:[#allocation5 + $0x78] sm:$0xff] }
 0x192   :  { %v546_v31 = vsel %vm545_vm2, %v544_v34, %v539_v6  ;;  %v991_v61 = vunpack.c.l.s8.bf16 %v907_v62  ;;  %v990_v12 = vunpack.c.l.s8.bf16 %v906_v32  ;;  %v993_v34 = vunpack.c.h.s8.bf16 %v907_v62 }
 0x193   :  { %v559_v26 = vrot.slane %v518_v8, %v536_v49  ;;  %v564_v38 = vrot.slane %v519_v0, %v543_v63  ;;  %v984_v49 = vunpack.c.h.s8.bf16 %v902_v16  ;;  %v1057_v63 = vunpack.c.h.s8.bf16 %v939_v7  ;;  %v940_v0 = vld [vmem:[#allocation5 + $0x130] sm:$0xff] }
 0x194   :  { %v1059_v8 = vunpack.c.l.s8.bf16 %v941_v1  ;;  %v1058_v6 = vunpack.c.l.s8.bf16 %v940_v0  ;;  %v1003_v16 = vunpack.c.l.s8.bf16 %v913_v43  ;;  %v1011_v46 = vunpack.c.l.s8.bf16 %v917_v45 }
 0x195   :  { %v560_v60 = vsel %vm538_vm1, %v559_v26, %v555_v54  ;;  %v909_v26 = vld [vmem:[#allocation5 + $0x38] sm:$0xff]  ;;  %v943_v54 = vld [vmem:[#allocation5 + $0x148] sm:$0xff]  ;;  %v1013_v62 = vunpack.c.h.s8.bf16 %v917_v45 }
 0x196   :  { %v565_v29 = vsel %vm545_vm2, %v564_v38, %v560_v60  ;;  %v1061_v38 = vunpack.c.h.s8.bf16 %v941_v1  ;;  %v992_v60 = vunpack.c.h.s8.bf16 %v906_v32  ;;  %v2407_v32 = vld [vmem:[#allocation5 + $0x88] sm:$0xff] }
 0x197   :  { %v567_v59 = vsel %vm566_vm3, %v565_v29, %v546_v31  ;;  %v995_v31 = vunpack.c.l.s8.bf16 %v909_v26  ;;  %v908_v29 = vld [vmem:[#allocation5 + $0x30] sm:$0xff]  ;;  %v1017_v45 = vunpack.c.h.s8.bf16 %v2407_v32 }
 0x198   :  { %v568_v28 = vpack.c.b16 %v567_v59, %v567_v59  ;;  %v1063_v59 = vunpack.c.l.s8.bf16 %v943_v54 }
 0x19a   :  { %1818 = vmatmul.mubr.msk.bf16.vlgmr.msra.gmra.mrb[0].mxu0 %vm669_vm4, %v568_v28  ;;  %1819 = vmatmul.mubr.msk.bf16.vlgmr.msra.gmra.mrb[0].mxu1 %vm669_vm4, %v568_v28 }
 0x19b   :  { %756 = vmatpush1.bf16.msra.mxu0 %v1991_v27  ;;  %797 = vmatpush1.bf16.msra.mxu1 %v1994_v51  ;;  %v1060_v27 = vunpack.c.h.s8.bf16 %v940_v0  ;;  %v942_v51 = vld [vmem:[#allocation5 + $0x140] sm:$0xff] }
 0x19c   :  { %757 = vmatprep.subr.bf16.mxu0 %v1999_v56  ;;  %798 = vmatprep.subr.bf16.mxu1 %v2002_v57  ;;  %v997_v56 = vunpack.c.h.s8.bf16 %v909_v26  ;;  %v1062_v57 = vunpack.c.l.s8.bf16 %v942_v51  ;;  %v1064_v39 = vunpack.c.h.s8.bf16 %v942_v51 }
 0x19d   :  { %787 = vmatprep.mubr.bf16.mxu0 %v2608_v40  ;;  %828 = vmatprep.mubr.bf16.mxu1 %v2608_v40 }
 0x19f   :  { %758 = vmatpush1.bf16.msra.mxu0 %v1997_v24  ;;  %799 = vmatpush1.bf16.msra.mxu1 %v2000_v3  ;;  %v1065_v24 = vunpack.c.h.s8.bf16 %v943_v54  ;;  %v945_v3 = vld [vmem:[#allocation5 + $0x158] sm:$0xff] }
 0x1a0   :  { %837 = vmatprep.subr.bf16.mxu0 %v2005_v30  ;;  %1234 = vmatprep.subr.bf16.mxu1 %v1047_v11  ;;  %v996_v30 = vunpack.c.h.s8.bf16 %v908_v29  ;;  %v999_v11 = vunpack.c.l.s8.bf16 %v911_v23 }
 0x1a2   :  { %1820 = vmatmul.mubr.msk.bf16.vlgmr.msra.gmra.mrb[4].mxu0 %vm669_vm4, %v568_v28  ;;  %1821 = vmatmul.mubr.msk.bf16.vlgmr.msra.gmra.mrb[4].mxu1 %vm669_vm4, %v568_v28 }
 0x1a3   :  { %838 = vmatpush1.bf16.msra.mxu0 %v2003_v9  ;;  %869 = vmatprep.mubr.bf16.mxu0 %v2608_v40  ;;  %v910_v40 = vld [vmem:[#allocation5 + $0x40] sm:$0xff]  ;;  %v1067_v9 = vunpack.c.l.s8.bf16 %v945_v3 }
 0x1a4   :  { %839 = vmatprep.subr.bf16.mxu0 %v2008_v35  ;;  %1235 = vmatpush1.bf16.msra.mxu1 %v1046_v41  ;;  %v944_v35 = vld [vmem:[#allocation5 + $0x150] sm:$0xff]  ;;  %v998_v41 = vunpack.c.l.s8.bf16 %v910_v40 }
 0x1a5   :  { %1236 = vmatprep.subr.bf16.mxu1 %v1049_v36  ;;  %v1066_v36 = vunpack.c.l.s8.bf16 %v944_v35 }
 0x1a7   :  { %840 = vmatpush1.bf16.msra.mxu0 %v2006_v52  ;;  %v1069_v52 = vunpack.c.h.s8.bf16 %v945_v3 }
 0x1a8   :  { %1152 = vmatprep.subr.bf16.mxu0 %v983_v37  ;;  %1237 = vmatpush1.bf16.msra.mxu1 %v1048_v44  ;;  %v1000_v37 = vunpack.c.h.s8.bf16 %v910_v40  ;;  %v912_v44 = vld [vmem:[#allocation5 + $0x50] sm:$0xff] }
 0x1a9   :  { %1238 = vmatprep.subr.bf16.mxu1 %v1051_v53  ;;  %v1068_v53 = vunpack.c.h.s8.bf16 %v944_v35  ;;  %v1002_v17 = vunpack.c.l.s8.bf16 %v912_v44 }
 0x1aa   :  { %1822 = vmatmul.mubr.msk.bf16.vlgmr.msra.gmra.mrb[8].mxu0 %vm669_vm4, %v568_v28  ;;  %v994_v28 = vunpack.c.l.s8.bf16 %v908_v29 }
 0x1ab   :  { %1153 = vmatpush1.bf16.msra.mxu0 %v982_v55  ;;  %v1005_v55 = vunpack.c.h.s8.bf16 %v913_v43 }
 0x1ac   :  { %1154 = vmatprep.subr.bf16.mxu0 %v985_v21  ;;  %1239 = vmatpush1.bf16.msra.mxu1 %v1050_v22  ;;  %v915_v21 = vld [vmem:[#allocation5 + $0x68] sm:$0xff]  ;;  %v1004_v22 = vunpack.c.h.s8.bf16 %v912_v44 }
 0x1ad   :  { %1240 = vmatprep.subr.bf16.mxu1 %v1053_v48  ;;  %v1007_v42 = vunpack.c.l.s8.bf16 %v915_v21  ;;  %v914_v48 = vld [vmem:[#allocation5 + $0x60] sm:$0xff] }
 0x1ae   :  { %v1006_v7 = vunpack.c.l.s8.bf16 %v914_v48 }
 0x1af   :  { %1155 = vmatpush1.bf16.msra.mxu0 %v984_v49  ;;  %v1009_v49 = vunpack.c.h.s8.bf16 %v915_v21 }
 0x1b0   :  { %1156 = vmatprep.subr.bf16.mxu0 %v987_v33  ;;  %1241 = vmatpush1.bf16.msra.mxu1 %v1052_v58  ;;  %v1008_v33 = vunpack.c.h.s8.bf16 %v914_v48  ;;  %v947_v58 = vld [vmem:[#allocation5 + $0x168] sm:$0xff] }
 0x1b1   :  { %1242 = vmatprep.subr.bf16.mxu1 %v1055_v25  ;;  %v916_v25 = vld [vmem:[#allocation5 + $0x70] sm:$0xff]  ;;  %v1073_v1 = vunpack.c.h.s8.bf16 %v947_v58 }
 0x1b3   :  { %1157 = vmatpush1.bf16.msra.mxu0 %v986_v47  ;;  %v1071_v47 = vunpack.c.l.s8.bf16 %v947_v58 }
 0x1b4   :  { %1158 = vmatprep.subr.bf16.mxu0 %v989_v2  ;;  %1243 = vmatpush1.bf16.msra.mxu1 %v1054_v4  ;;  %v1010_v2 = vunpack.c.l.s8.bf16 %v916_v25  ;;  %v946_v4 = vld [vmem:[#allocation5 + $0x160] sm:$0xff] }
 0x1b5   :  { %1244 = vmatprep.subr.bf16.mxu1 %v1057_v63  ;;  %v1070_v63 = vunpack.c.l.s8.bf16 %v946_v4 }
 0x1b7   :  { %1159 = vmatpush1.bf16.msra.mxu0 %v988_v5  ;;  %v1012_v5 = vunpack.c.h.s8.bf16 %v916_v25 }
 0x1b8   :  { %1160 = vmatprep.subr.bf16.mxu0 %v991_v61  ;;  %1245 = vmatpush1.bf16.msra.mxu1 %v1056_v50  ;;  %v1072_v61 = vunpack.c.h.s8.bf16 %v946_v4  ;;  %v949_v50 = vld [vmem:[#allocation5 + $0x178] sm:$0xff] }
 0x1b9   :  { %1246 = vmatprep.subr.bf16.mxu1 %v1059_v8  ;;  %v1015_v8 = vunpack.c.l.s8.bf16 %v2407_v32  ;;  %v1075_v0 = vunpack.c.l.s8.bf16 %v949_v50  ;;  %v921_v4 = vld [vmem:[#allocation5 + $0x98] sm:$0xff]  ;;  %v920_v32 = vld [vmem:[#allocation5 + $0x90] sm:$0xff] }
 0x1bb   :  { %1161 = vmatpush1.bf16.msra.mxu0 %v990_v12  ;;  %v948_v12 = vld [vmem:[#allocation5 + $0x170] sm:$0xff] }
 0x1bc   :  { %1162 = vmatprep.subr.bf16.mxu0 %v993_v34  ;;  %1247 = vmatpush1.bf16.msra.mxu1 %v1058_v6  ;;  %v1074_v34 = vunpack.c.l.s8.bf16 %v948_v12  ;;  %v1077_v6 = vunpack.c.h.s8.bf16 %v949_v50  ;;  %v1076_v26 = vunpack.c.h.s8.bf16 %v948_v12  ;;  %v950_v12 = vld [vmem:[#allocation5 + $0x180] sm:$0xff] }
 0x1bd   :  { %1248 = vmatprep.subr.bf16.mxu1 %v1061_v38  ;;  %v2410_v38 = vld [vmem:[#allocation5 + $0x188] sm:$0xff] }
 0x1be   :  { %v1079_v54 = vunpack.c.l.s8.bf16 %v2410_v38 }
 0x1bf   :  { %1163 = vmatpush1.bf16.msra.mxu0 %v992_v60  ;;  %v427_v60 = vld [vmem:[#allocation7] ss:$8 sm:$0xf] }
 0x1c0   :  { %1164 = vmatprep.subr.bf16.mxu0 %v995_v31  ;;  %1249 = vmatpush1.bf16.msra.mxu1 %v1060_v27  ;;  %v428_v31 = vld [vmem:[#allocation7] ss:$8 sm:$0xf0]  ;;  %v2416_v27 = vsub.s32 3, %v2254_v13 }
 0x1c1   :  { %1250 = vmatprep.subr.bf16.mxu1 %v1063_v59  ;;  %v2413_v29 = vor.u32 %v428_v31, %v427_v60  ;;  %v1018_v60 = vunpack.c.l.s8.bf16 %v920_v32  ;;  %v1078_v31 = vunpack.c.l.s8.bf16 %v950_v12 }
 0x1c3   :  { %1165 = vmatpush1.bf16.msra.mxu0 %v994_v28  ;;  %v461_v59 = vrot.slane %v2413_v29, %v2257_v14  ;;  %v465_v51 = vrot.slane %v2413_v29, %v2269_v18  ;;  %v473_v28 = vrot.slane %v2413_v29, %v2416_v27 }
 0x1c4   :  { %1166 = vmatprep.subr.bf16.mxu0 %v997_v56  ;;  %1251 = vmatpush1.bf16.msra.mxu1 %v1062_v57 }
 0x1c5   :  { %1252 = vmatprep.subr.bf16.mxu1 %v1065_v24 }
 0x1c7   :  { %1167 = vmatpush1.bf16.msra.mxu0 %v996_v30 }
 0x1c8   :  { %1168 = vmatprep.subr.bf16.mxu0 %v999_v11  ;;  %1253 = vmatpush1.bf16.msra.mxu1 %v1064_v39 }
 0x1c9   :  { %1254 = vmatprep.subr.bf16.mxu1 %v1067_v9  ;;  %v2427_v9 = vsub.s32 7, %v2254_v13 }
 0x1cb   :  { %1169 = vmatpush1.bf16.msra.mxu0 %v998_v41 }
 0x1cc   :  { %1170 = vmatprep.subr.bf16.mxu0 %v1001_v10  ;;  %1255 = vmatpush1.bf16.msra.mxu1 %v1066_v36 }
 0x1cd   :  { %1256 = vmatprep.subr.bf16.mxu1 %v1069_v52 }
 0x1cf   :  { %1171 = vmatpush1.bf16.msra.mxu0 %v1000_v37  ;;  %v477_v37 = vrot.slane %v2413_v29, %v2260_v15 }
 0x1d0   :  { %1172 = vmatprep.subr.bf16.mxu0 %v1003_v16  ;;  %1257 = vmatpush1.bf16.msra.mxu1 %v1068_v53  ;;  %v918_v16 = vld [vmem:[#allocation5 + $0x80] sm:$0xff] }
 0x1d1   :  { %1258 = vmatprep.subr.bf16.mxu1 %v1071_v47  ;;  %v1016_v50 = vunpack.c.h.s8.bf16 %v918_v16 }
 0x1d3   :  { %1173 = vmatpush1.bf16.msra.mxu0 %v1002_v17  ;;  %v481_v17 = vrot.slane %v2413_v29, %v2272_v19 }
 0x1d4   :  { %1174 = vmatprep.subr.bf16.mxu0 %v1005_v55  ;;  %1259 = vmatpush1.bf16.msra.mxu1 %v1070_v63  ;;  %v489_v55 = vrot.slane %v2413_v29, %v2427_v9 }
 0x1d5   :  { %1260 = vmatprep.subr.bf16.mxu1 %v1073_v1 }
 0x1d7   :  { %1175 = vmatpush1.bf16.msra.mxu0 %v1004_v22 }
 0x1d8   :  { %1176 = vmatprep.subr.bf16.mxu0 %v1007_v42  ;;  %1261 = vmatpush1.bf16.msra.mxu1 %v1072_v61  ;;  %v1014_v42 = vunpack.c.l.s8.bf16 %v918_v16 }
 0x1d9   :  { %1262 = vmatprep.subr.bf16.mxu1 %v1075_v0  ;;  %v1019_v0 = vunpack.c.l.s8.bf16 %v921_v4 }
 0x1db   :  { %1177 = vmatpush1.bf16.msra.mxu0 %v1006_v7 }
 0x1dc   :  { %1178 = vmatprep.subr.bf16.mxu0 %v1009_v49  ;;  %1263 = vmatpush1.bf16.msra.mxu1 %v1074_v34 }
 0x1dd   :  { %1264 = vmatprep.subr.bf16.mxu1 %v1077_v6 }
 0x1df   :  { %1179 = vmatpush1.bf16.msra.mxu0 %v1008_v33 }
 0x1e0   :  { %1180 = vmatprep.subr.bf16.mxu0 %v1011_v46  ;;  %1265 = vmatpush1.bf16.msra.mxu1 %v1076_v26 }
 0x1e1   :  { %1275 = vmatprep.subr.bf16.mxu1 %v1079_v54 }
 0x1e3   :  { %1181 = vmatpush1.bf16.msra.mxu0 %v1010_v2 }
 0x1e4   :  { %1182 = vmatprep.subr.bf16.mxu0 %v1013_v62 }
 0x1e7   :  { %1183 = vmatpush1.bf16.msra.mxu0 %v1012_v5 }
 0x1e8   :  { %1193 = vmatprep.subr.bf16.mxu0 %v1015_v8 }
 0x26d   :  { %v707_v56 = vpop.f32.mrb[0].mxu0  ;;  %v2424_v57 = vpop.f32.mrb[0].mxu1 }
 0x26e   :  { %v708_v23 = vadd.f32 %v707_v56, %v461_v59  ;;  %v709_v24 = vpop.f32.mrb[1].mxu0  ;;  %v750_v3 = vpop.f32.mrb[1].mxu1 }
 0x26f   :  { %v710_v30 = vadd.f32 %v709_v24, %v465_v51  ;;  %v751_v11 = vadd.f32 %v750_v3, %v473_v28  ;;  %v711_v40 = vpop.f32.mrb[2].mxu0  ;;  %v752_v39 = vpop.f32.mrb[2].mxu1  ;;  %v1021_v28 = vunpack.c.h.s8.bf16 %v921_v4  ;;  %v923_v24 = vld [vmem:[#allocation5 + $0xa8] sm:$0xff]  ;;  %v953_v3 = vld [vmem:[#allocation5 + $0x198] sm:$0xff] }
 0x270   :  { %v878_v35 = vmax.f32 %v708_v23, 0.0  ;;  %v712_v41 = vpop.f32.mrb[3].mxu0  ;;  %v753_v10 = vpop.f32.mrb[3].mxu1  ;;  %v1081_v23 = vunpack.c.h.s8.bf16 %v2410_v38  ;;  %v2443_v40 = vld [vmem:[#allocation8] sm:$0xff]   ;;  %v2445_v39 = vld [vmem:[#allocation8 + $0x8] sm:$0xff]   ;;  %v2449_v38 = vld [vmem:[#allocation8 + $0x10] sm:$0xff]  }
 0x271   :  { %v879_v36 = vmax.f32 %v710_v30, 0.0  ;;  %v881_v43 = vmax.f32 %v751_v11, 0.0  ;;  %v1080_v41 = vunpack.c.h.s8.bf16 %v950_v12  ;;  %v1023_v10 = vunpack.c.l.s8.bf16 %v923_v24  ;;  %1444 = vrot.lane.b32.xlu1 %v2443_v40, %s2147_s4  ;;  %1446 = vrot.lane.b32.xlu0 %v2445_v39, %s2147_s4 }
 0x272   :  { %v888_v52 = vmin.f32 %v878_v35, 6.0  ;;  %v1020_v35 = vunpack.c.h.s8.bf16 %v920_v32  ;;  %v956_v32 = vld [vmem:[#allocation5 + $0x1b0] sm:$0xff] }
 0x273   :  { %v889_v44 = vmin.f32 %v879_v36, 6.0  ;;  %v891_v53 = vmin.f32 %v881_v43, 6.0  ;;  %v1083_v36 = vunpack.c.l.s8.bf16 %v953_v3  ;;  %v922_v43 = vld [vmem:[#allocation5 + $0xa0] sm:$0xff] }
 0x274   :  { %v1142_v48 = vpack.c.bf16 %v888_v52, %v888_v52  ;;  %v952_v52 = vld [vmem:[#allocation5 + $0x190] sm:$0xff]  ;;  %v1022_v16 = vunpack.c.l.s8.bf16 %v922_v43 }
 0x275   :  { %v1143_v13 = vpack.c.bf16 %v889_v44, %v889_v44  ;;  %v789_v21 = vpop.f32.mrb[4].mxu0  ;;  %v2435_v22 = vpop.f32.mrb[4].mxu1  ;;  %v1145_v58 = vpack.c.bf16 %v891_v53, %v891_v53  ;;  %v1082_v44 = vunpack.c.l.s8.bf16 %v952_v52  ;;  %v1025_v53 = vunpack.c.h.s8.bf16 %v923_v24  ;;  %1448 = vrot.lane.b32.xlu1 %v2449_v38, %s2147_s4  ;;  %v928_v24 = vld [vmem:[#allocation5 + $0xd0] sm:$0xff] }
 0x276   :  { %v790_v7 = vadd.f32 %v789_v21, %v477_v37  ;;  %v791_v49 = vpop.f32.mrb[5].mxu0  ;;  %v832_v33 = vpop.f32.mrb[5].mxu1  ;;  %v2453_v37 = vld [vmem:[#allocation8 + $0x20] sm:$0xff]   ;;  %v2457_v21 = vld [vmem:[#allocation8 + $0x18] sm:$0xff]  }
 0x277   :  { %v792_v25 = vadd.f32 %v791_v49, %v481_v17  ;;  %v833_v46 = vadd.f32 %v832_v33, %v489_v55  ;;  %v793_v47 = vpop.f32.mrb[6].mxu0  ;;  %v834_v2 = vpop.f32.mrb[6].mxu1  ;;  %1184 = vmatprep.mubr.bf16.mxu0 %v1143_v13  ;;  %v1085_v17 = vunpack.c.h.s8.bf16 %v953_v3  ;;  %v925_v55 = vld [vmem:[#allocation5 + $0xb8] sm:$0xff]  ;;  %v955_v13 = vld [vmem:[#allocation5 + $0x1a8] sm:$0xff]  ;;  %1452 = vrot.lane.b32.xlu0 %v2453_v37, %s2147_s4  ;;  %v958_v3 = vld [vmem:[#allocation5 + $0x1c0] sm:$0xff] }
 0x278   :  { %v882_v62 = vmax.f32 %v790_v7, 0.0  ;;  %v794_v63 = vpop.f32.mrb[7].mxu0  ;;  %v835_v1 = vpop.f32.mrb[7].mxu1  ;;  %1185 = vmatmul.mubr.bf16.vlgmr.msra.gmra.mrb[12].mxu0 %v1142_v48  ;;  %v1024_v48 = vunpack.c.h.s8.bf16 %v922_v43  ;;  %v1084_v7 = vunpack.c.h.s8.bf16 %v952_v52  ;;  %v1027_v49 = vunpack.c.l.s8.bf16 %v925_v55 }
 0x279   :  { %v883_v5 = vmax.f32 %v792_v25, 0.0  ;;  %v885_v61 = vmax.f32 %v833_v46, 0.0  ;;  %1194 = vmatpush1.bf16.msra.mxu0 %v1014_v42  ;;  %1225 = vmatprep.mubr.bf16.mxu0 %v1145_v58  ;;  %v2461_v42 = vld [vmem:[#allocation8 + $0x30] sm:$0xff]   ;;  %v1087_v33 = vunpack.c.l.s8.bf16 %v955_v13  ;;  %v2465_v25 = vld [vmem:[#allocation8 + $0x28] sm:$0xff]   ;;  %v1029_v2 = vunpack.c.h.s8.bf16 %v925_v55  ;;  %v2471_v1 = vld [vmem:[#allocation8 + $0x38] sm:$0xff]  }
 0x27a   :  { %v892_v8 = vmin.f32 %v882_v62, 6.0  ;;  %1195 = vmatprep.subr.bf16.mxu0 %v1017_v45  ;;  %v924_v45 = vld [vmem:[#allocation5 + $0xb0] sm:$0xff]  ;;  %v954_v58 = vld [vmem:[#allocation5 + $0x1a0] sm:$0xff]  ;;  %1450 = vrot.lane.b32.xlu1 %v2457_v21, %s2147_s4  ;;  %v1089_v4 = vunpack.c.h.s8.bf16 %v955_v13  ;;  %v927_v62 = vld [vmem:[#allocation5 + $0xc8] sm:$0xff]  ;;  %v1036_v43 = vunpack.c.h.s8.bf16 %v928_v24  ;;  %v1096_v52 = vunpack.c.h.s8.bf16 %v958_v3 }
 0x27b   :  { %v893_v34 = vmin.f32 %v883_v5, 6.0  ;;  %v895_v6 = vmin.f32 %v885_v61, 6.0  ;;  %1456 = vrot.lane.b32.xlu0 %v2461_v42, %s2147_s4  ;;  %v1026_v46 = vunpack.c.l.s8.bf16 %v924_v45  ;;  %v1086_v47 = vunpack.c.l.s8.bf16 %v954_v58  ;;  %v957_v63 = vld [vmem:[#allocation5 + $0x1b8] sm:$0xff] }
 0x27c   :  { %v1146_v59 = vpack.c.bf16 %v892_v8, %v892_v8  ;;  %v1028_v5 = vunpack.c.h.s8.bf16 %v924_v45  ;;  %v1088_v61 = vunpack.c.h.s8.bf16 %v954_v58  ;;  %v1091_v8 = vunpack.c.l.s8.bf16 %v957_v63  ;;  %v963_v45 = vld [vmem:[#allocation5 + $0x1e8] sm:$0xff] }
 0x27d   :  { %v1147_v26 = vpack.c.bf16 %v893_v34, %v893_v34  ;;  %1196 = vmatpush1.bf16.msra.mxu0 %v1016_v50  ;;  %v2438_v54 = vpop.f32.mrb[8].mxu0  ;;  %v1149_v30 = vpack.c.bf16 %v895_v6, %v895_v6  ;;  %v1031_v50 = vunpack.c.l.s8.bf16 %v927_v62  ;;  %v1090_v34 = vunpack.c.l.s8.bf16 %v956_v32 }
 0x27e   :  { %v2440_v51 = vpop.f32.mrb[9].mxu0  ;;  %1197 = vmatprep.subr.bf16.mxu0 %v1019_v0  ;;  %1454 = vrot.lane.b32.xlu1 %v2465_v25, %s2147_s4  ;;  %v926_v0 = vld [vmem:[#allocation5 + $0xc0] sm:$0xff]  ;;  %v1033_v6 = vunpack.c.h.s8.bf16 %v927_v62  ;;  %v932_v62 = vld [vmem:[#allocation5 + $0xf0] sm:$0xff] }
 0x27f   :  { %v875_v56 = vpop.f32.mrb[10].mxu0  ;;  %1266 = vmatprep.mubr.bf16.mxu1 %v1147_v26  ;;  %v1030_v12 = vunpack.c.l.s8.bf16 %v926_v0  ;;  %v1093_v26 = vunpack.c.h.s8.bf16 %v957_v63  ;;  %v962_v63 = vld [vmem:[#allocation5 + $0x1e0] sm:$0xff] }
 0x280   :  { %v876_v11 = vpop.f32.mrb[11].mxu0  ;;  %1267 = vmatmul.mubr.bf16.vlgmr.msra.gmra.mrb[8].mxu1 %v1146_v59  ;;  %v1032_v59 = vunpack.c.h.s8.bf16 %v926_v0  ;;  %v2609_v0 = vld [vmem:[#allocation15_spill] sm:$0xff] }
 0x281   :  { %1198 = vmatpush1.bf16.msra.mxu0 %v1018_v60  ;;  %1276 = vmatpush1.bf16.msra.mxu1 %v1078_v31  ;;  %v929_v60 = vld [vmem:[#allocation5 + $0xd8] sm:$0xff]  ;;  %v959_v31 = vld [vmem:[#allocation5 + $0x1c8] sm:$0xff]  ;;  %v1094_v11 = vunpack.c.l.s8.bf16 %v958_v3 }
 0x282   :  { %1307 = vmatprep.mubr.bf16.mxu1 %v1149_v30  ;;  %1199 = vmatprep.subr.bf16.mxu0 %v1021_v28  ;;  %v1092_v28 = vunpack.c.h.s8.bf16 %v956_v32  ;;  %v1035_v56 = vunpack.c.l.s8.bf16 %v929_v60  ;;  %v1034_v30 = vunpack.c.l.s8.bf16 %v928_v24  ;;  %v485_v32 = vrot.slane %v2413_v29, %v2609_v0 }
 0x283   :  { %1277 = vmatprep.subr.bf16.mxu1 %v1081_v23  ;;  %1458 = vrot.lane.b32.xlu1 %v2471_v1, %s2147_s4  ;;  %v1095_v23 = vunpack.c.l.s8.bf16 %v959_v31 }
 0x285   :  { %1200 = vmatpush1.bf16.msra.mxu0 %v1020_v35  ;;  %1278 = vmatpush1.bf16.msra.mxu1 %v1080_v41  ;;  %v1037_v35 = vunpack.c.h.s8.bf16 %v929_v60  ;;  %v1097_v41 = vunpack.c.h.s8.bf16 %v959_v31  ;;  %v1104_v60 = vunpack.c.h.s8.bf16 %v962_v63 }
 0x286   :  { %1201 = vmatprep.subr.bf16.mxu0 %v1023_v10  ;;  %1279 = vmatprep.subr.bf16.mxu1 %v1083_v36  ;;  %v931_v10 = vld [vmem:[#allocation5 + $0xe8] sm:$0xff]  ;;  %v961_v36 = vld [vmem:[#allocation5 + $0x1d8] sm:$0xff] }
 0x289   :  { %1202 = vmatpush1.bf16.msra.mxu0 %v1022_v16  ;;  %1280 = vmatpush1.bf16.msra.mxu1 %v1082_v44  ;;  %v1039_v16 = vunpack.c.l.s8.bf16 %v931_v10  ;;  %v1099_v44 = vunpack.c.l.s8.bf16 %v961_v36 }
 0x28a   :  { %1203 = vmatprep.subr.bf16.mxu0 %v1025_v53  ;;  %1281 = vmatprep.subr.bf16.mxu1 %v1085_v17  ;;  %v930_v53 = vld [vmem:[#allocation5 + $0xe0] sm:$0xff]  ;;  %v960_v17 = vld [vmem:[#allocation5 + $0x1d0] sm:$0xff] }
 0x28b   :  { %v1038_v55 = vunpack.c.l.s8.bf16 %v930_v53  ;;  %v1098_v13 = vunpack.c.l.s8.bf16 %v960_v17  ;;  %v1040_v58 = vunpack.c.h.s8.bf16 %v930_v53  ;;  %v969_v53 = vld [vmem:[#allocation5 + $0x218] sm:$0xff] }
 0x28d   :  { %1204 = vmatpush1.bf16.msra.mxu0 %v1024_v48  ;;  %1282 = vmatpush1.bf16.msra.mxu1 %v1084_v7  ;;  %v469_v48 = vrot.slane %v2413_v29, %v2275_v20  ;;  %v1041_v7 = vunpack.c.h.s8.bf16 %v931_v10 }
 0x28e   :  { %1205 = vmatprep.subr.bf16.mxu0 %v1027_v49  ;;  %1283 = vmatprep.subr.bf16.mxu1 %v1087_v33  ;;  %v1101_v49 = vunpack.c.h.s8.bf16 %v961_v36  ;;  %v933_v33 = vld [vmem:[#allocation5 + $0xf8] sm:$0xff]  ;;  %v966_v36 = vld [vmem:[#allocation5 + $0x200] sm:$0xff] }
 0x291   :  { %1206 = vmatpush1.bf16.msra.mxu0 %v1026_v46  ;;  %1284 = vmatpush1.bf16.msra.mxu1 %v1086_v47  ;;  %v1100_v46 = vunpack.c.h.s8.bf16 %v960_v17  ;;  %v749_v47 = vadd.f32 %v2424_v57, %v469_v48  ;;  %v1105_v57 = vunpack.c.h.s8.bf16 %v963_v45  ;;  %v1112_v17 = vunpack.c.h.s8.bf16 %v966_v36 }
 0x292   :  { %1207 = vmatprep.subr.bf16.mxu0 %v1029_v2  ;;  %1285 = vmatprep.subr.bf16.mxu1 %v1089_v4  ;;  %v1043_v2 = vunpack.c.l.s8.bf16 %v933_v33  ;;  %v1103_v4 = vunpack.c.l.s8.bf16 %v963_v45 }
 0x295   :  { %1208 = vmatpush1.bf16.msra.mxu0 %v1028_v5  ;;  %1286 = vmatpush1.bf16.msra.mxu1 %v1088_v61  ;;  %v2478_v5 = vld [vmem:[#allocation7 + $0x40] ss:$8 sm:$0x3]  ;;  %v1042_v61 = vunpack.c.l.s8.bf16 %v932_v62 }
 0x296   :  { %1209 = vmatprep.subr.bf16.mxu0 %v1031_v50  ;;  %1287 = vmatprep.subr.bf16.mxu1 %v1091_v8  ;;  %v1102_v50 = vunpack.c.l.s8.bf16 %v962_v63  ;;  %v880_v8 = vmax.f32 %v749_v47, 0.0  ;;  %v972_v63 = vld [vmem:[#allocation5 + $0x230] sm:$0xff] }
 0x298   :  { %v890_v31 = vmin.f32 %v880_v8, 6.0  ;;  %v975_v8 = vld [vmem:[#allocation5 + $0x248] sm:$0xff] }
 0x299   :  { %1210 = vmatpush1.bf16.msra.mxu0 %v1030_v12  ;;  %1288 = vmatpush1.bf16.msra.mxu1 %v1090_v34  ;;  %v1045_v12 = vunpack.c.h.s8.bf16 %v933_v33  ;;  %v497_v34 = vrot.slane %v2478_v5, %v2269_v18 }
 0x29a   :  { %1211 = vmatprep.subr.bf16.mxu0 %v1033_v6  ;;  %1289 = vmatprep.subr.bf16.mxu1 %v1093_v26  ;;  %v965_v6 = vld [vmem:[#allocation5 + $0x1f8] sm:$0xff]  ;;  %v1044_v26 = vunpack.c.h.s8.bf16 %v932_v62  ;;  %v1144_v24 = vpack.c.bf16 %v890_v31, %v890_v31 }
 0x29b   :  { %v874_v29 = vadd.f32 %v2440_v51, %v497_v34 }
 0x29d   :  { %1212 = vmatpush1.bf16.msra.mxu0 %v1032_v59  ;;  %1290 = vmatpush1.bf16.msra.mxu1 %v1092_v28  ;;  %v831_v59 = vadd.f32 %v2435_v22, %v485_v32  ;;  %v1107_v28 = vunpack.c.l.s8.bf16 %v965_v6  ;;  %v1124_v32 = vunpack.c.h.s8.bf16 %v972_v63 }
 0x29e   :  { %1213 = vmatprep.subr.bf16.mxu0 %v1035_v56  ;;  %1291 = vmatprep.subr.bf16.mxu1 %v1095_v23  ;;  %v964_v56 = vld [vmem:[#allocation5 + $0x1f0] sm:$0xff] }
 0x29f   :  { %v1106_v23 = vunpack.c.l.s8.bf16 %v964_v56  ;;  %v884_v3 = vmax.f32 %v831_v59, 0.0  ;;  %v976_v59 = vld [vmem:[#allocation5 + $0x250] sm:$0xff] }
 0x2a1   :  { %1214 = vmatpush1.bf16.msra.mxu0 %v1034_v30  ;;  %1292 = vmatpush1.bf16.msra.mxu1 %v1094_v11  ;;  %v1109_v30 = vunpack.c.h.s8.bf16 %v965_v6  ;;  %v887_v11 = vmax.f32 %v874_v29, 0.0  ;;  %v894_v10 = vmin.f32 %v884_v3, 6.0  ;;  %v1129_v6 = vunpack.c.h.s8.bf16 %v975_v8  ;;  %v979_v29 = vld [vmem:[#allocation5 + $0x268] sm:$0xff]  ;;  %v978_v3 = vld [vmem:[#allocation5 + $0x260] sm:$0xff] }
 0x2a2   :  { %1215 = vmatprep.subr.bf16.mxu0 %v1037_v35  ;;  %1293 = vmatprep.subr.bf16.mxu1 %v1097_v41  ;;  %v967_v35 = vld [vmem:[#allocation5 + $0x208] sm:$0xff]  ;;  %v1108_v41 = vunpack.c.h.s8.bf16 %v964_v56 }
 0x2a3   :  { %v1111_v22 = vunpack.c.l.s8.bf16 %v967_v35  ;;  %v1148_v51 = vpack.c.bf16 %v894_v10, %v894_v10  ;;  %v1136_v10 = vunpack.c.h.s8.bf16 %v978_v3 }
 0x2a5   :  { %1216 = vmatpush1.bf16.msra.mxu0 %v1036_v43  ;;  %1294 = vmatpush1.bf16.msra.mxu1 %v1096_v52  ;;  %v897_v43 = vmin.f32 %v887_v11, 6.0  ;;  %v1110_v52 = vunpack.c.l.s8.bf16 %v966_v36  ;;  %v493_v11 = vrot.slane %v2478_v5, %v2257_v14 }
 0x2a6   :  { %1217 = vmatprep.subr.bf16.mxu0 %v1039_v16  ;;  %1295 = vmatprep.subr.bf16.mxu1 %v1099_v44  ;;  %v1113_v16 = vunpack.c.h.s8.bf16 %v967_v35  ;;  %v1137_v35 = vunpack.c.h.s8.bf16 %v979_v29 }
 0x2a7   :  { %v1151_v44 = vpack.c.bf16 %v897_v43, %v897_v43  ;;  %v980_v43 = vld [vmem:[#allocation5 + $0x270] sm:$0xff] }
 0x2a9   :  { %1218 = vmatpush1.bf16.msra.mxu0 %v1038_v55  ;;  %1296 = vmatpush1.bf16.msra.mxu1 %v1098_v13  ;;  %v1115_v55 = vunpack.c.l.s8.bf16 %v969_v53  ;;  %v968_v13 = vld [vmem:[#allocation5 + $0x210] sm:$0xff] }
 0x2aa   :  { %1219 = vmatprep.subr.bf16.mxu0 %v1041_v7  ;;  %1297 = vmatprep.subr.bf16.mxu1 %v1101_v49  ;;  %v1114_v48 = vunpack.c.l.s8.bf16 %v968_v13  ;;  %v1117_v7 = vunpack.c.h.s8.bf16 %v969_v53  ;;  %v971_v49 = vld [vmem:[#allocation5 + $0x228] sm:$0xff]  ;;  %v1116_v33 = vunpack.c.h.s8.bf16 %v968_v13 }
 0x2ab   :  { %v1119_v45 = vunpack.c.l.s8.bf16 %v971_v49  ;;  %v1121_v47 = vunpack.c.h.s8.bf16 %v971_v49 }
 0x2ad   :  { %1220 = vmatpush1.bf16.msra.mxu0 %v1040_v58  ;;  %1298 = vmatpush1.bf16.msra.mxu1 %v1100_v46  ;;  %v970_v58 = vld [vmem:[#allocation5 + $0x220] sm:$0xff] }
 0x2ae   :  { %1221 = vmatprep.subr.bf16.mxu0 %v1043_v2  ;;  %1299 = vmatprep.subr.bf16.mxu1 %v1103_v4  ;;  %v1118_v46 = vunpack.c.l.s8.bf16 %v970_v58  ;;  %v973_v2 = vld [vmem:[#allocation5 + $0x238] sm:$0xff]  ;;  %v1120_v4 = vunpack.c.h.s8.bf16 %v970_v58 }
 0x2af   :  { %v1123_v62 = vunpack.c.l.s8.bf16 %v973_v2 }
 0x2b1   :  { %1222 = vmatpush1.bf16.msra.mxu0 %v1042_v61  ;;  %1300 = vmatpush1.bf16.msra.mxu1 %v1102_v50  ;;  %v1122_v61 = vunpack.c.l.s8.bf16 %v972_v63  ;;  %v1125_v50 = vunpack.c.h.s8.bf16 %v973_v2 }
 0x2b2   :  { %1223 = vmatprep.subr.bf16.mxu0 %v1045_v12  ;;  %1301 = vmatprep.subr.bf16.mxu1 %v1105_v57  ;;  %v1127_v12 = vunpack.c.l.s8.bf16 %v975_v8  ;;  %v974_v57 = vld [vmem:[#allocation5 + $0x240] sm:$0xff] }
 0x2b3   :  { %v1126_v34 = vunpack.c.l.s8.bf16 %v974_v57 }
 0x2b5   :  { %1224 = vmatpush1.bf16.msra.mxu0 %v1044_v26  ;;  %1302 = vmatpush1.bf16.msra.mxu1 %v1104_v60  ;;  %v977_v26 = vld [vmem:[#allocation5 + $0x258] sm:$0xff]  ;;  %v1128_v60 = vunpack.c.h.s8.bf16 %v974_v57 }
 0x2b6   :  { %1303 = vmatprep.subr.bf16.mxu1 %v1107_v28  ;;  %v1131_v31 = vunpack.c.l.s8.bf16 %v977_v26  ;;  %v1130_v28 = vunpack.c.l.s8.bf16 %v976_v59  ;;  %v1133_v56 = vunpack.c.h.s8.bf16 %v977_v26 }
 0x2b8   :  { %1226 = vmatmul.mubr.bf16.vlgmr.msra.gmra.mrb[12].mxu0 %v1144_v24  ;;  %v1135_v24 = vunpack.c.l.s8.bf16 %v979_v29 }
 0x2b9   :  { %1304 = vmatpush1.bf16.msra.mxu1 %v1106_v23  ;;  %v1132_v23 = vunpack.c.h.s8.bf16 %v976_v59 }
 0x2ba   :  { %1305 = vmatprep.subr.bf16.mxu1 %v1109_v30  ;;  %v1134_v30 = vunpack.c.l.s8.bf16 %v978_v3 }
 0x2bd   :  { %1306 = vmatpush1.bf16.msra.mxu1 %v1108_v41  ;;  %v981_v41 = vld [vmem:[#allocation5 + $0x278] sm:$0xff] }
 0x2be   :  { %1316 = vmatprep.subr.bf16.mxu1 %v1111_v22  ;;  %v872_v22 = vadd.f32 %v2438_v54, %v493_v11  ;;  %v1139_v36 = vunpack.c.l.s8.bf16 %v981_v41 }
 0x2c0   :  { %1308 = vmatmul.mubr.bf16.vlgmr.msra.gmra.mrb[8].mxu1 %v1148_v51  ;;  %v886_v51 = vmax.f32 %v872_v22, 0.0 }
 0x2c1   :  { %1317 = vmatpush1.bf16.msra.mxu1 %v1110_v52  ;;  %1348 = vmatprep.mubr.bf16.mxu1 %v1151_v44  ;;  %v1138_v52 = vunpack.c.l.s8.bf16 %v980_v43  ;;  %v1140_v44 = vunpack.c.h.s8.bf16 %v980_v43 }
 0x2c2   :  { %1318 = vmatprep.subr.bf16.mxu1 %v1113_v16  ;;  %v1141_v16 = vunpack.c.h.s8.bf16 %v981_v41  ;;  %v896_v53 = vmin.f32 %v886_v51, 6.0 }
 0x2c4   :  { %v1150_v5 = vpack.c.bf16 %v896_v53, %v896_v53 }
 0x2c5   :  { %1319 = vmatpush1.bf16.msra.mxu1 %v1112_v17 }
 0x2c6   :  { %1320 = vmatprep.subr.bf16.mxu1 %v1115_v55  ;;  %v2153_v55 = vmov 0.0  }
 0x2c7   :  { %1859 = vmatprep.subr.bf16.mxu0 %v2153_v55  ;;  %1875 = vmatprep.mubr.msk.bf16.mxu0 %vm2154_vm5, %v2153_v55 }
 0x2c9   :  { %1321 = vmatpush1.bf16.msra.mxu1 %v1114_v48 }
 0x2ca   :  { %1322 = vmatprep.subr.bf16.mxu1 %v1117_v7 }
 0x2cd   :  { %1323 = vmatpush1.bf16.msra.mxu1 %v1116_v33 }
 0x2ce   :  { %1324 = vmatprep.subr.bf16.mxu1 %v1119_v45 }
 0x2d1   :  { %1325 = vmatpush1.bf16.msra.mxu1 %v1118_v46 }
 0x2d2   :  { %1326 = vmatprep.subr.bf16.mxu1 %v1121_v47 }
 0x2d5   :  { %1327 = vmatpush1.bf16.msra.mxu1 %v1120_v4  ;;  %v901_v4 = vld [vmem:[#allocation7 + $0x2] ss:$8 sm:$0x3] }
 0x2d6   :  { %1328 = vmatprep.subr.bf16.mxu1 %v1123_v62  ;;  %v899_v62 = vld [vmem:[#allocation7 + $0x1] ss:$8 sm:$0x3]  ;;  %v1361_v59 = vrot.slane %v901_v4, %v2257_v14 }
 0x2d9   :  { %1329 = vmatpush1.bf16.msra.mxu1 %v1122_v61  ;;  %v1365_v61 = vrot.slane %v901_v4, %v2269_v18 }
 0x2da   :  { %1330 = vmatprep.subr.bf16.mxu1 %v1125_v50 }
 0x2dd   :  { %1331 = vmatpush1.bf16.msra.mxu1 %v1124_v32 }
 0x2de   :  { %1332 = vmatprep.subr.bf16.mxu1 %v1127_v12  ;;  %v1378_v12 = vrot.slane %v899_v62, %v2269_v18 }
 0x2e1   :  { %1333 = vmatpush1.bf16.msra.mxu1 %v1126_v34 }
 0x2e2   :  { %1334 = vmatprep.subr.bf16.mxu1 %v1129_v6 }
 0x2e3   :  { %v1445_v17 = vpop.permute.xlu1 %1444  ;;  %v1447_v54 = vpop.permute.xlu0 %1446 }
 0x2e4   :  { %1860 = vmatpush3.bf16.msra.mxu0 %v1445_v17 }
 0x2e5   :  { %1335 = vmatpush1.bf16.msra.mxu1 %v1128_v60  ;;  %1861 = vmatprep.subr.bf16.mxu0 %v2153_v55 }
 0x2e6   :  { %1336 = vmatprep.subr.bf16.mxu1 %v1131_v31 }
 0x2e7   :  { %v1449_v13 = vpop.permute.xlu1 %1448 }
 0x2e8   :  { %1862 = vmatpush3.bf16.msra.mxu0 %v1447_v54  ;;  %v1588_v54 = vld [vmem:[#allocation8 + $0x58] ss:$8 sps:$4 sm:$0xff]  }
 0x2e9   :  { %1337 = vmatpush1.bf16.msra.mxu1 %v1130_v28  ;;  %1863 = vmatprep.subr.bf16.mxu0 %v2153_v55  ;;  %v1453_v7 = vpop.permute.xlu0 %1452  ;;  %v1374_v28 = vrot.slane %v899_v62, %v2257_v14 }
 0x2ea   :  { %1338 = vmatprep.subr.bf16.mxu1 %v1133_v56 }
 0x2ec   :  { %1864 = vmatpush3.bf16.msra.mxu0 %v1449_v13  ;;  %v1451_v48 = vpop.permute.xlu1 %1450  ;;  %v1589_v13 = vunpack.c.l.bf16 %v1588_v54 }
 0x2ed   :  { %1339 = vmatpush1.bf16.msra.mxu1 %v1132_v23  ;;  %1865 = vmatprep.subr.bf16.mxu0 %v2153_v55  ;;  %v1457_v33 = vpop.permute.xlu0 %1456 }
 0x2ee   :  { %1340 = vmatprep.subr.bf16.mxu1 %v1135_v24  ;;  %v1558_v24 = vld [vmem:[#allocation8 + $0x50] sm:$0x1] }
 0x2ef   :  { %v1559_v3 = vunpack.c.l.bf16 %v1558_v24 }
 0x2f0   :  { %1866 = vmatpush3.bf16.msra.mxu0 %v1451_v48  ;;  %v1455_v49 = vpop.permute.xlu1 %1454  ;;  %v1581_v48 = vld [vmem:[%s2595_s1] sm:$0x3]  ;;  %s2156_s1 = smov [#allocation10]  }
 0x2f1   :  { %1341 = vmatpush1.bf16.msra.mxu1 %v1134_v30  ;;  %1867 = vmatprep.subr.bf16.mxu0 %v2153_v55  ;;  %v1385_v30 = vld [vmem:[#allocation7 + $0x3] ss:$0 sm:$0xff]  ;;  %v1573_v22 = vrot.slane %v1559_v3, %v2269_v18  ;;  %s1787_s28 = sshll.u32 %s2156_s1, 4  ;;  %s1788_s28 = int_to_ptr.vmem [resolvable:$true] %s1787_s28 }
 0x2f2   :  { %1342 = vmatprep.subr.bf16.mxu1 %v1137_v35  ;;  %s2109_s29 = scalar_lea.vmem %s1788_s28, 32  ;;  %p2114_p5 = scmp.lt.s32.totalorder %s1788_s28, %s1788_s28 }
 0x2f3   :  { %p2110_p4 = scmp.ne.s32.totalorder %s1788_s28, %s2109_s29  ;;  %p2115_p6 = scmp.lt.s32.totalorder %s2109_s29, %s2109_s29 }
 0x2f4   :  { %1868 = vmatpush3.bf16.msra.mxu0 %v1453_v7  ;;  %v1635_v7 = vrot.slane %v1589_v13, %v2272_v19 }
 0x2f5   :  { %1343 = vmatpush1.bf16.msra.mxu1 %v1136_v10  ;;  %1869 = vmatprep.subr.bf16.mxu0 %v2153_v55  ;;  %v1459_v45 = vpop.permute.xlu1 %1458  ;;  %p2116_p7 = por %p2115_p6, %p2114_p5 }
 0x2f6   :  { %1344 = vmatprep.subr.bf16.mxu1 %v1139_v36  ;;  %v1564_v36 = vrot.slane %v1559_v3, %v2257_v14 }
 0x2f7   :  { %p2117_p8 = pnand %p2116_p7, %p2110_p4 }
 0x2f8   :  { %1870 = vmatpush3.bf16.msra.mxu0 %v1455_v49  ;;  %v1594_v49 = vrot.slane %v1589_v13, %v2257_v14 }
 0x2f9   :  { %1345 = vmatpush1.bf16.msra.mxu1 %v1138_v52  ;;  %1871 = vmatprep.subr.bf16.mxu0 %v2153_v55 }
 0x2fa   :  { %1346 = vmatprep.subr.bf16.mxu1 %v1141_v16 }
 0x2fc   :  { %1872 = vmatpush3.bf16.msra.mxu0 %v1457_v33 }
 0x2fd   :  { %1347 = vmatpush1.bf16.msra.mxu1 %v1140_v44  ;;  %1873 = vmatprep.subr.bf16.mxu0 %v2153_v55  ;;  %v1560_v44 = vld [vmem:[#allocation7 + $0x4] ss:$0 sm:$0xff] }
 0x300   :  { %1349 = vmatmul.mubr.bf16.vlgmr.msra.gmra.mrb[8].mxu1 %v1150_v5  ;;  %1874 = vmatpush3.bf16.msra.mxu0 %v1459_v45  ;;  %v1603_v45 = vrot.slane %v1589_v13, %v2269_v18 }
 0x301   :  { %1879 = vmatprep.subr.bf16.mxu0 %v2153_v55 }
 0x38b   :  { %v1227_v58 = vpop.f32.mrb[12].mxu0 }
 0x38c   :  { %v1229_v46 = vpop.f32.mrb[13].mxu0 }
 0x38d   :  { %v1231_v47 = vpop.f32.mrb[14].mxu0 }
 0x38e   :  { %v1232_v2 = vpop.f32.mrb[15].mxu0 }
 0x3d3   :  { %v1350_v63 = vpop.f32.mrb[8].mxu1 }
 0x3d4   :  { %v1899_v50 = vadd.f32 %v1350_v63, %v1227_v58  ;;  %v1352_v8 = vpop.f32.mrb[9].mxu1  ;;  %v1611_v63 = vrot.slane %v1589_v13, %v2275_v20 }
 0x3d5   :  { %v1900_v32 = vadd.f32 %v1352_v8, %v1229_v46  ;;  %v1354_v57 = vpop.f32.mrb[10].mxu1  ;;  %v1619_v8 = vrot.slane %v1589_v13, %v2416_v27 }
 0x3d6   :  { %v1355_v34 = vpop.f32.mrb[11].mxu1  ;;  %v1627_v57 = vrot.slane %v1589_v13, %v2260_v15 }
 0x3d7   :  { %v1369_v6 = vmul.f32 %v1900_v32, %v1365_v61 }
 0x3d9   :  { %v1382_v26 = vadd.f32 %v1378_v12, %v1369_v6 }
 0x3db   :  { %v1384_v60 = vmax.f32 %v1382_v26, 0.0  ;;  %v1643_v26 = vrot.slane %v1589_v13, %v2609_v0 }
 0x3dd   :  { %v1387_v31 = vpack.c.bf16 %v1384_v60, %v1384_v60 }
 0x3df   :  { %1876 = vmatmul.mubr.bf16.vlgmr.msra.gmra.mrb[16].mxu0 %v1387_v31 }
 0x3e0   :  { %1880 = vmatpush3.bf16.msra.mxu0 %v2443_v40  ;;  %1895 = vmatprep.mubr.msk.bf16.mxu0 %vm2154_vm5, %v2153_v55  ;;  %v1368_v40 = vmul.f32 %v1899_v50, %v1361_v59  ;;  %v1651_v59 = vrot.slane %v1589_v13, %v2427_v9 }
 0x3e1   :  { %1881 = vmatprep.subr.bf16.mxu0 %v2153_v55 }
 0x3e4   :  { %1882 = vmatpush3.bf16.msra.mxu0 %v2445_v39  ;;  %v1381_v39 = vadd.f32 %v1374_v28, %v1368_v40 }
 0x3e5   :  { %1883 = vmatprep.subr.bf16.mxu0 %v2153_v55 }
 0x3e8   :  { %1884 = vmatpush3.bf16.msra.mxu0 %v2449_v38  ;;  %v1383_v38 = vmax.f32 %v1381_v39, 0.0 }
 0x3e9   :  { %1885 = vmatprep.subr.bf16.mxu0 %v2153_v55 }
 0x3ec   :  { %1886 = vmatpush3.bf16.msra.mxu0 %v2457_v21  ;;  %v1386_v21 = vpack.c.bf16 %v1383_v38, %v1383_v38 }
 0x3ed   :  { %1887 = vmatprep.subr.bf16.mxu0 %v2153_v55 }
 0x3f0   :  { %1888 = vmatpush3.bf16.msra.mxu0 %v2453_v37 }
 0x3f1   :  { %1889 = vmatprep.subr.bf16.mxu0 %v2153_v55 }
 0x3f4   :  { %1890 = vmatpush3.bf16.msra.mxu0 %v2465_v25 }
 0x3f5   :  { %1891 = vmatprep.subr.bf16.mxu0 %v2153_v55 }
 0x3f8   :  { %1892 = vmatpush3.bf16.msra.mxu0 %v2461_v42 }
 0x3f9   :  { %1893 = vmatprep.subr.bf16.mxu0 %v2153_v55 }
 0x3fc   :  { %1894 = vmatpush3.bf16.msra.mxu0 %v2471_v1 }
 0x3ff   :  { %1896 = vmatmul.mubr.bf16.vlgmr.msra.gmra.mrb[20].mxu0 %v1386_v21 }
 0x4b2   :  { %v1502_v37 = vpop.f32.mrb[16].mxu0 }
 0x4b3   :  { %v1877_v56 = vpop.f32.mrb[17].mxu0 }
 0x4b4   :  { %v1505_v29 = vpop.f32.mrb[18].mxu0 }
 0x4b5   :  { %v1878_v23 = vpop.f32.mrb[19].mxu0 }
 0x4d2   :  { %v1550_v25 = vpop.f32.mrb[20].mxu0 }
 0x4d3   :  { %v1551_v11 = vadd.f32 %v1550_v25, %v1502_v37  ;;  %v1897_v35 = vpop.f32.mrb[21].mxu0 }
 0x4d4   :  { %v1553_v41 = vpop.f32.mrb[22].mxu0  ;;  %v1671_v35 = vunpack.c.h.bf16 %v1588_v54 }
 0x4d5   :  { %v1556_v10 = vadd.f32 %v1551_v11, %v1385_v30  ;;  %v1898_v42 = vpop.f32.mrb[23].mxu0 }
 0x4d7   :  { %v1557_v1 = vmax.f32 %v1556_v10, 0.0  ;;  %v1590_v10 = vld [vmem:[#allocation7 + $0x5] ss:$0 sm:$0xff] }
 0x4d9   :  { %v1574_v43 = vmul.f32 %v1573_v22, %v1557_v1  ;;  %v1565_v52 = vmul.f32 %v1564_v36, %v1557_v1 }
 0x4db   :  { %v1575_v51 = vsel %vm1566_vm6, %v1574_v43, 0.0  ;;  %v1567_v16 = vsel %vm1566_vm6, %v1565_v52, 0.0  ;;  %v1717_v43 = vrot.slane %v1671_v35, %v2272_v19  ;;  %v1676_v52 = vrot.slane %v1671_v35, %v2257_v14 }
 0x4dc   :  { %1576 = vadd.xlane.f32.xlu1 %v1575_v51  ;;  %1568 = vadd.xlane.f32.xlu0 %v1567_v16  ;;  %v1733_v16 = vrot.slane %v1671_v35, %v2427_v9 }
 0x569   :  { %v1577_v53 = vpop.xlane.xlu1 %1576  ;;  %v1569_v5 = vpop.xlane.xlu0 %1568 }
 0x56a   :  { %v1579_v17 = vsel %vm1578_vm7, %v1569_v5, %v1577_v53 }
 0x56b   :  { %v1580_v55 = vadd.f32 %v1579_v17, %v1560_v44  ;;  %v1685_v44 = vrot.slane %v1671_v35, %v2269_v18  ;;  %v1693_v17 = vrot.slane %v1671_v35, %v2275_v20 }
 0x56d   :  { %1583 = vrot.lane.b32.xlu0 %v1580_v55, %s2155_s0 }
 0x5df   :  { %v1584_v33 = vpop.permute.xlu0 %1583 }
 0x5e0   :  { %v1587_v58 = vsel %vm1586_vm8, %v1581_v48, %v1584_v33 }
 0x5e1   :  { %v1636_v46 = vmul.f32 %v1635_v7, %v1587_v58  ;;  %v1595_v47 = vmul.f32 %v1594_v49, %v1587_v58  ;;  %v1604_v62 = vmul.f32 %v1603_v45, %v1587_v58  ;;  %v1612_v50 = vmul.f32 %v1611_v63, %v1587_v58 }
 0x5e2   :  { %v1620_v12 = vmul.f32 %v1619_v8, %v1587_v58  ;;  %v1628_v6 = vmul.f32 %v1627_v57, %v1587_v58  ;;  %v1644_v31 = vmul.f32 %v1643_v26, %v1587_v58  ;;  %v1652_v28 = vmul.f32 %v1651_v59, %v1587_v58  ;;  %v1747_v57 = vld [vmem:[#allocation8 + $0x68] sm:$0x1] }
 0x5e3   :  { %v1637_v2 = vsel %vm1596_vm9, %v1636_v46, 0.0  ;;  %v1597_v4 = vsel %vm1596_vm9, %v1595_v47, 0.0  ;;  %v1605_v61 = vsel %vm1596_vm9, %v1604_v62, 0.0  ;;  %v1613_v32 = vsel %vm1596_vm9, %v1612_v50, 0.0 }
 0x5e4   :  { %1638 = vadd.xlane.f32.xlu0 %v1637_v2  ;;  %1598 = vadd.xlane.f32.xlu1 %v1597_v4  ;;  %v1621_v34 = vsel %vm1596_vm9, %v1620_v12, 0.0  ;;  %v1629_v60 = vsel %vm1596_vm9, %v1628_v6, 0.0  ;;  %v1645_v40 = vsel %vm1596_vm9, %v1644_v31, 0.0  ;;  %v1653_v39 = vsel %vm1596_vm9, %v1652_v28, 0.0  ;;  %v1672_v31 = vld [vmem:[#allocation7 + $0x6] ss:$0 sm:$0xff] }
 0x5e5   :  { %v1701_v49 = vrot.slane %v1671_v35, %v2416_v27  ;;  %v1709_v45 = vrot.slane %v1671_v35, %v2260_v15  ;;  %v1725_v47 = vrot.slane %v1671_v35, %v2609_v0  ;;  %v1748_v6 = vunpack.c.l.bf16 %v1747_v57 }
 0x5e8   :  { %1606 = vadd.xlane.f32.xlu1 %v1605_v61 }
 0x5ec   :  { %1614 = vadd.xlane.f32.xlu1 %v1613_v32 }
 0x5f0   :  { %1622 = vadd.xlane.f32.xlu1 %v1621_v34 }
 0x5f4   :  { %1630 = vadd.xlane.f32.xlu1 %v1629_v60 }
 0x5f8   :  { %1646 = vadd.xlane.f32.xlu1 %v1645_v40 }
 0x5fc   :  { %1654 = vadd.xlane.f32.xlu1 %v1653_v39 }
 0x671   :  { %v1599_v38 = vpop.xlane.xlu1 %1598  ;;  %v1639_v11 = vpop.xlane.xlu0 %1638 }
 0x675   :  { %v1607_v21 = vpop.xlane.xlu1 %1606 }
 0x676   :  { %v1656_v23 = vsel %vm1578_vm7, %v1599_v38, %v1607_v21  ;;  %v1761_v38 = vrot.slane %v1748_v6, %v2269_v18  ;;  %v1753_v21 = vrot.slane %v1748_v6, %v2257_v14 }
 0x679   :  { %v1615_v37 = vpop.xlane.xlu1 %1614 }
 0x67a   :  { %v1657_v24 = vsel %vm1586_vm8, %v1656_v23, %v1615_v37 }
 0x67d   :  { %v1623_v56 = vpop.xlane.xlu1 %1622 }
 0x67e   :  { %v1659_v3 = vsel %vm1658_vm10, %v1657_v24, %v1623_v56 }
 0x681   :  { %v1631_v29 = vpop.xlane.xlu1 %1630 }
 0x682   :  { %v1661_v30 = vsel %vm1660_vm11, %v1659_v3, %v1631_v29  ;;  %v1749_v3 = vld [vmem:[#allocation7 + $0x7] ss:$0 sm:$0xff] }
 0x683   :  { %v1663_v41 = vsel %vm1662_vm12, %v1661_v30, %v1639_v11 }
 0x685   :  { %v1647_v25 = vpop.xlane.xlu1 %1646 }
 0x686   :  { %v1665_v42 = vsel %vm1664_vm13, %v1663_v41, %v1647_v25 }
 0x689   :  { %v1655_v22 = vpop.xlane.xlu1 %1654 }
 0x68a   :  { %v1667_v36 = vsel %vm1666_vm14, %v1665_v42, %v1655_v22 }
 0x68b   :  { %v1668_v1 = vadd.f32 %v1667_v36, %v1590_v10 }
 0x68d   :  { %v1669_v51 = vmax.f32 %v1668_v1, 0.0 }
 0x68f   :  { %v1718_v53 = vmul.f32 %v1717_v43, %v1669_v51  ;;  %v1677_v5 = vmul.f32 %v1676_v52, %v1669_v51  ;;  %v1734_v13 = vmul.f32 %v1733_v16, %v1669_v51  ;;  %v1686_v48 = vmul.f32 %v1685_v44, %v1669_v51 }
 0x690   :  { %v1694_v9 = vmul.f32 %v1693_v17, %v1669_v51  ;;  %v1702_v20 = vmul.f32 %v1701_v49, %v1669_v51  ;;  %v1710_v46 = vmul.f32 %v1709_v45, %v1669_v51  ;;  %v1726_v4 = vmul.f32 %v1725_v47, %v1669_v51 }
 0x691   :  { %v1719_v55 = vsel %vm1678_vm15, %v1718_v53, 0.0  ;;  %v1679_v54 = vsel %vm1678_vm15, %v1677_v5, 0.0  ;;  %v1735_v19 = vsel %vm1678_vm15, %v1734_v13, 0.0  ;;  %v1687_v7 = vsel %vm1678_vm15, %v1686_v48, 0.0 }
 0x692   :  { %1720 = vadd.xlane.f32.xlu0 %v1719_v55  ;;  %1680 = vadd.xlane.f32.xlu1 %v1679_v54  ;;  %v1695_v33 = vsel %vm1678_vm15, %v1694_v9, 0.0  ;;  %v1703_v58 = vsel %vm1678_vm15, %v1702_v20, 0.0  ;;  %v1711_v2 = vsel %vm1678_vm15, %v1710_v46, 0.0  ;;  %v1727_v27 = vsel %vm1678_vm15, %v1726_v4, 0.0 }
 0x696   :  { %1736 = vadd.xlane.f32.xlu0 %v1735_v19  ;;  %1688 = vadd.xlane.f32.xlu1 %v1687_v7 }
 0x69a   :  { %1696 = vadd.xlane.f32.xlu1 %v1695_v33 }
 0x69e   :  { %1704 = vadd.xlane.f32.xlu1 %v1703_v58 }
 0x6a2   :  { %1712 = vadd.xlane.f32.xlu1 %v1711_v2 }
 0x6a6   :  { %1728 = vadd.xlane.f32.xlu1 %v1727_v27 }
 0x71f   :  { %v1681_v62 = vpop.xlane.xlu1 %1680  ;;  %v1721_v8 = vpop.xlane.xlu0 %1720 }
 0x723   :  { %v1689_v63 = vpop.xlane.xlu1 %1688  ;;  %v1737_v59 = vpop.xlane.xlu0 %1736 }
 0x724   :  { %v1738_v15 = vsel %vm1578_vm7, %v1681_v62, %v1689_v63 }
 0x727   :  { %v1697_v61 = vpop.xlane.xlu1 %1696 }
 0x728   :  { %v1739_v32 = vsel %vm1586_vm8, %v1738_v15, %v1697_v61 }
 0x72b   :  { %v1705_v50 = vpop.xlane.xlu1 %1704 }
 0x72c   :  { %v1740_v12 = vsel %vm1658_vm10, %v1739_v32, %v1705_v50 }
 0x72f   :  { %v1713_v0 = vpop.xlane.xlu1 %1712 }
 0x730   :  { %v1741_v34 = vsel %vm1660_vm11, %v1740_v12, %v1713_v0 }
 0x731   :  { %v1742_v26 = vsel %vm1662_vm12, %v1741_v34, %v1721_v8 }
 0x733   :  { %v1729_v60 = vpop.xlane.xlu1 %1728 }
 0x734   :  { %v1743_v40 = vsel %vm1664_vm13, %v1742_v26, %v1729_v60 }
 0x735   :  { %v1744_v28 = vsel %vm1666_vm14, %v1743_v40, %v1737_v59 }
 0x736   :  { %v1745_v39 = vadd.f32 %v1744_v28, %v1672_v31 }
 0x738   :  { %v1746_v37 = vmax.f32 %v1745_v39, 0.0 }
 0x73a   :  { %v1762_v56 = vmul.f32 %v1761_v38, %v1746_v37  ;;  %v1754_v29 = vmul.f32 %v1753_v21, %v1746_v37 }
 0x73c   :  { %v1763_v23 = vsel %vm1678_vm15, %v1762_v56, 0.0  ;;  %v1755_v24 = vsel %vm1678_vm15, %v1754_v29, 0.0 }
 0x73d   :  { %1764 = vadd.xlane.f32.xlu0 %v1763_v23  ;;  %1756 = vadd.xlane.f32.xlu1 %v1755_v24 }
 0x7ca   :  { %v1765_v30 = vpop.xlane.xlu0 %1764  ;;  %v1757_v25 = vpop.xlane.xlu1 %1756 }
 0x7cb   :  { %v1766_v11 = vsel %vm1578_vm7, %v1757_v25, %v1765_v30 }
 0x7cc   :  { %v1767_v35 = vadd.f32 %v1766_v11, %v1749_v3 }
 0x7ce   :  { %v1769_v18 = vsel %vm1768_vm0, %v1767_v35, -inf }
 0x7cf   :  { %1770 = vmax.xlane.f32.xlu1 %v1769_v18 }
 0x85c   :  { %v1771_v14 = vpop.xlane.xlu1 %1770 }
 0x85d   :  { %v1772_v41 = vsub.f32 %v1767_v35, %v1771_v14 }
 0x85f   :  { %v1773_v10 = vmul.f32 1.442695, %v1772_v41 }
 0x861   :  { %2017 = vpow2.f32 %v1773_v10 }
 0x86b   :  { %v2018_v42 = vpop.eup %2017 }
 0x86c   :  { %v1775_v22 = vsel %vm1768_vm0, %v2018_v42, 0.0 }
 0x86d   :  { %1776 = vadd.xlane.f32.xlu0 %v1775_v22 }
 0x8fa   :  { %v1777_v36 = vpop.xlane.xlu0 %1776 }
 0x8fb   :  { %2019 = vrcp.f32 %v1777_v36 }
 0x905   :  { %v2020_v1 = vpop.eup %2019 }
 0x906   :  { %v1779_v43 = vmul.f32 %v2020_v1, %v2018_v42 }
 0x908   :  { %1780 = vst.msk [vmem:[#allocation10] sm:$0x3] %vm1768_vm0, %v1779_v43 }
 0x909   :  { %2120 = shalt.err (!%p2117_p8)
}
 0x90a   :  { %s2121_s8 = scalar_lea.hbm %s2600_s6, 32 }
 0x90b   :  { %p2122_p9 = scmp.ne.s32.totalorder %s2600_s6, %s2121_s8  ;;  %p2125_p10 = scmp.lt.u32.totalorder %s2121_s8, %s2600_s6 }
 0x90d   :  { %p2127_p11 = pnand %p2125_p10, %p2122_p9 }
 0x90f   :  { %2130 = shalt.err (!%p2127_p11)
}
 0x910   :  { %1790 = dma.vmem_to_hbm [thread:$0]  %s1788_s28, 32, %s2600_s6, [#allocation4]  }
 0x911   :  { %2137 = dma.done.wait [#allocation4], 32  }
 0x912   :  { %2138 = vsyncadd [#allocation4], 4294967264 }
 0x913   :  { %1794 = vsyncpa [#allocation3], 1 }
 0x914   :  { %1795 = vsyncpa [#allocation6], 1 }
 0x915   :  { %1796 = vsyncpa [#allocation9], 1 }
 0x916   :  { %1797 = vsyncpa [#allocation4], 1 }

</bundles_post_ra>
